<compile_context>
chip_gen: v6e
topology: v6e:2x2x1
jax: 0.10.0
libtpu: 0.0.40
codegen_flags: <defaults>
</compile_context>

<pallas_src>
from functools import partial

import jax
import jax.numpy as jnp
from jax import lax
from jax.experimental import pallas as pl
from jax.experimental.pallas import tpu as pltpu

EPS = 0.001        # eps of the ConvBN / ConvBNActivation BatchNorms
ID_EPS = 1e-5      # eps of the rbr_identity BatchNorm2d (PyTorch default)


# ----------------------------------------------------------------------------- kernel
def _basic_block_kernel(x_ref, we_ref, wp_ref, o_ref, *, W, HW):
    # x_ref : (Cin, L)        bf16  channels on sublanes, pixels (whole images) on lanes
    # we_ref: (Cexp, Cin+11)  bf16  [ w1e | 9 depthwise taps (k = kh*3+kw) | b1 | bdw ]
    # wp_ref: (Cout, Cexp+1)  bf16  [ w3e | b3 ]
    # o_ref : (Cout, L)       bf16
    Cin, L = x_ref.shape
    Cexp = we_ref.shape[0]

    x = x_ref[...]                                              # bf16 (Cin, L)

    w1 = we_ref[:, :Cin]                                        # bf16 (Cexp, Cin)
    b1 = we_ref[:, Cin + 9:Cin + 10].astype(jnp.float32)        # (Cexp, 1)
    bdw = we_ref[:, Cin + 10:Cin + 11].astype(jnp.float32)      # (Cexp, 1)

    # ---- expand: 1x1 conv + folded BN + ReLU6 ; bf16 MXU operands, f32 accumulation
    y1 = jnp.dot(w1, x, preferred_element_type=jnp.float32) + b1
    y1 = jnp.clip(y1, 0.0, 6.0)                                 # f32 (Cexp, L)

    # ---- RepVGGplus depthwise 3x3 (branches pre-folded), stride=1, padding=1.
    # Off-centre taps come from circular lane rolls (XLU, off the VALU critical path);
    # row/col masks zero every out-of-image tap, including any wrap across the image
    # boundaries of the fused lane axis.
    idx = jax.lax.broadcasted_iota(jnp.int32, (1, L), 1)
    col = idx % W                                               # column within row
    pos = idx % HW                                              # position within image
    m_w = {0: col != 0, 2: col != (W - 1)}                      # w-1 / w+1 in bounds
    m_h = {0: pos >= W, 2: pos < (HW - W)}                      # h-1 / h+1 in bounds

    def tap(k):
        return we_ref[:, Cin + k:Cin + k + 1].astype(jnp.float32)   # (Cexp, 1)

    z = y1 * tap(4) + bdw                                       # centre tap doubles as init
    for kh in range(3):                                         # unrolled 8 off-centre taps
        for kw in range(3):
            if kh == 1 and kw == 1:
                continue
            d = (kh - 1) * W + (kw - 1)                         # flat neighbour offset
            s = pltpu.roll(y1, shift=(-d) % L, axis=1)          # s[:, p] = y1[:, (p+d) % L]
            mask = None
            if kh != 1:
                mask = m_h[kh]
            if kw != 1:
                mask = m_w[kw] if mask is None else (mask & m_w[kw])
            z = z + jnp.where(mask, s, 0.0) * tap(kh * 3 + kw)
    z = jnp.maximum(z, 0.0)                                     # RepVGG nonlinearity = ReLU

    # ---- project: 1x1 conv + BN (Identity activation), residual add, final ReLU6
    w3 = wp_ref[:, :Cexp]                                       # bf16 (Cout, Cexp)
    b3 = wp_ref[:, Cexp:Cexp + 1].astype(jnp.float32)           # (Cout, 1)
    out = jnp.dot(w3, z.astype(jnp.bfloat16),
                  preferred_element_type=jnp.float32) + b3
    out = jnp.clip(out + x.astype(jnp.float32), 0.0, 6.0)       # identity residual
    o_ref[...] = out.astype(o_ref.dtype)                        # lane-dense bf16 store


def basic_block_forward(x_nchw, we_pack, wp_pack, *, images_per_step=None):
    N, Cin, H, W = x_nchw.shape
    HW = H * W
    Cexp = we_pack.shape[0]
    Cout = wp_pack.shape[0]
    assert Cin == Cout, "identity residual requires in_planes == out_planes"
    assert we_pack.shape[1] == Cin + 11 and wp_pack.shape[1] == Cexp + 1

    if images_per_step is None:
        # Default: fuse the whole batch into one grid step (per-step overhead dominates
        # at small sizes; v5e/v6e have a single TensorCore).
        # TODO(synk): on v7x (2 TCs) pass images_per_step = max(1, N // 2) so the
        # 'parallel' grid axis keeps both cores busy.
        images_per_step = N
    assert N % images_per_step == 0
    steps = N // images_per_step
    L = images_per_step * HW                                    # fused lane width per step

    # channels-major layout: pixels of all images on the lane axis
    x2 = jnp.transpose(x_nchw.reshape(N, Cin, HW), (1, 0, 2)).reshape(Cin, N * HW)

    flops = 2 * N * HW * (Cin * Cexp + 9 * Cexp + Cexp * Cout)
    bytes_accessed = int(x2.size * x2.dtype.itemsize
                         + N * Cout * HW * 2
                         + we_pack.size * we_pack.dtype.itemsize
                         + wp_pack.size * wp_pack.dtype.itemsize)

    out = pl.pallas_call(
        partial(_basic_block_kernel, W=W, HW=HW),
        out_shape=jax.ShapeDtypeStruct((Cout, N * HW), x_nchw.dtype),
        grid_spec=pltpu.PrefetchScalarGridSpec(
            num_scalar_prefetch=0,
            grid=(steps,),
            in_specs=[
                pl.BlockSpec((Cin, L), lambda i: (0, i)),
                pl.BlockSpec(we_pack.shape, lambda i: (0, 0)),
                pl.BlockSpec(wp_pack.shape, lambda i: (0, 0)),
            ],
            out_specs=pl.BlockSpec((Cout, L), lambda i: (0, i)),
        ),
        compiler_params=pltpu.CompilerParams(dimension_semantics=("parallel",)),
        cost_estimate=pl.CostEstimate(flops=flops, transcendentals=0,
                                      bytes_accessed=bytes_accessed),
    )(x2, we_pack, wp_pack)

    return jnp.transpose(out.reshape(Cout, N, HW), (1, 0, 2)).reshape(N, Cout, H, W)


# ----------------------------------------------------------------------------- BN folding / params
def _fold_bn(gamma, beta, mean, var, eps):
    s = gamma / jnp.sqrt(var + eps)
    return s, beta - mean * s


def _bn_params(key, c):
    k1, k2, k3, k4 = jax.random.split(key, 4)
    gamma = jax.random.uniform(k1, (c,), jnp.float32, 0.5, 1.5)
    beta = 0.1 * jax.random.normal(k2, (c,), jnp.float32)
    mean = 0.1 * jax.random.normal(k3, (c,), jnp.float32)
    var = jax.random.uniform(k4, (c,), jnp.float32, 0.5, 1.5)
    return gamma, beta, mean, var


def make_params(key, cin, cexp, cout):
    ks = jax.random.split(key, 8)

    # expand 1x1 ConvBNActivation  (torch weight shape (Cexp, Cin, 1, 1))
    W1 = 0.2 * jax.random.normal(ks[0], (cexp, cin), jnp.float32)
    s1, bb1 = _fold_bn(*_bn_params(ks[1], cexp), EPS)
    w1e = W1 * s1[:, None]                            # (Cexp, Cin)
    b1 = bb1                                          # (Cexp,)

    # RepVGGplusBlock (depthwise, groups = Cexp): fold dense 3x3, 1x1 and identity BN
    Kd = 0.2 * jax.random.normal(ks[2], (cexp, 3, 3), jnp.float32)   # rbr_dense (Cexp,1,3,3)
    sd, bd = _fold_bn(*_bn_params(ks[3], cexp), EPS)
    K1 = 0.2 * jax.random.normal(ks[4], (cexp,), jnp.float32)        # rbr_1x1  (Cexp,1,1,1)
    s11, b11 = _fold_bn(*_bn_params(ks[5], cexp), EPS)
    sid, bid = _fold_bn(*_bn_params(ks[6], cexp), ID_EPS)            # rbr_identity BN
    wdw = Kd * sd[:, None, None]                                     # (Cexp,3,3)
    wdw = wdw.at[:, 1, 1].add(K1 * s11 + sid)                        # fold 1x1 + identity at centre
    bdw = bd + b11 + bid                                             # (Cexp,)

    # project 1x1 ConvBNActivation (Identity activation)  (torch weight (Cout, Cexp, 1, 1))
    W3 = 0.2 * jax.random.normal(ks[7], (cout, cexp), jnp.float32)
    s3, bb3 = _fold_bn(*_bn_params(jax.random.fold_in(key, 99), cout), EPS)
    w3e = W3 * s3[:, None]                            # (Cout, Cexp)
    b3 = bb3                                          # (Cout,)

    return w1e, b1, wdw, bdw, w3e, b3


def pack_params(w1e, b1, wdw, bdw, w3e, b3, dtype=jnp.bfloat16):
    cexp, cin = w1e.shape
    we = jnp.concatenate([w1e, wdw.reshape(cexp, 9), b1[:, None], bdw[:, None]], axis=1)
    wp = jnp.concatenate([w3e, b3[:, None]], axis=1)
    return we.astype(dtype), wp.astype(dtype)


# ----------------------------------------------------------------------------- pure-JAX reference
def reference(x_nchw, w1e, b1, wdw, bdw, w3e, b3):
    cexp = w1e.shape[0]
    hp = lax.Precision.HIGHEST
    x = jnp.transpose(x_nchw, (0, 2, 3, 1)).astype(jnp.float32)              # NHWC
    y1 = jnp.clip(jnp.einsum('nhwc,ec->nhwe', x, w1e, precision=hp) + b1, 0.0, 6.0)
    k = jnp.transpose(wdw, (1, 2, 0))[:, :, None, :]                         # HWIO, I=1 depthwise
    z = lax.conv_general_dilated(y1, k, (1, 1), 'SAME',
                                 dimension_numbers=('NHWC', 'HWIO', 'NHWC'),
                                 feature_group_count=cexp, precision=hp)
    z = jnp.maximum(z + bdw, 0.0)
    z = z.astype(jnp.bfloat16).astype(jnp.float32)    # mirror the kernel's bf16 MXU feed
    out = jnp.einsum('nhwe,oe->nhwo', z, w3e, precision=hp) + b3
    out = jnp.clip(out + x, 0.0, 6.0)
    return jnp.transpose(out, (0, 3, 1, 2))                                  # back to NCHW


# ----------------------------------------------------------------------------- main
if __name__ == "__main__":
    N, H, W = 2, 16, 16
    Cin = Cout = 16          # residual requires in_planes == out_planes (downsample=None)
    Cexp = 32

    key = jax.random.PRNGKey(0)
    kx, kp = jax.random.split(key)
    x_f32 = jax.random.normal(kx, (N, Cin, H, W), jnp.float32)   # NCHW, as in PyTorch
    params_f32 = make_params(kp, Cin, Cexp, Cout)

    # bf16 storage (f32 accumulation in-kernel) — halves HBM traffic on all TPU gens
    x = x_f32.astype(jnp.bfloat16)
    we_pack, wp_pack = pack_params(*params_f32, dtype=jnp.bfloat16)

    out = basic_block_forward(x, we_pack, wp_pack)
    jax.block_until_ready(out)

    # Reference uses the same bf16-rounded inputs/weights, so the check measures the
    # kernel's own arithmetic (spatial indexing, branch folding, mixed precision).
    params_rounded = [p.astype(jnp.bfloat16).astype(jnp.float32) for p in params_f32]
    ref = reference(x.astype(jnp.float32), *params_rounded)

    assert out.shape == (N, Cout, H, W)
    err = float(jnp.max(jnp.abs(out.astype(jnp.float32) - ref)))
    assert err < 6e-2, f"mismatch vs reference: {err}"

    print("KERNEL_OK")
</pallas_src>

<mosaic_0001>
module attributes {stable_mosaic.version = 11 : i64} {
  func.func @_basic_block_kernel(%arg0: i32, %arg1: memref<16x512xbf16, #tpu.memory_space<vmem>>, %arg2: memref<32x27xbf16, #tpu.memory_space<vmem>>, %arg3: memref<16x33xbf16, #tpu.memory_space<vmem>>, %arg4: memref<16x512xbf16, #tpu.memory_space<vmem>>) attributes {dimension_semantics = [#tpu.dimension_semantics<parallel>], iteration_bounds = array<i64: 1>, scalar_prefetch = 0 : i64, scratch_operands = 0 : i64, tpu.core_type = #tpu.core_type<tc>, window_params = [{transform_indices = @transform_0, window_bounds = array<i64: 16, 512>}, {pipeline_mode = #tpu.pipeline_mode<synchronous>, transform_indices = @transform_1, window_bounds = array<i64: 32, 27>}, {pipeline_mode = #tpu.pipeline_mode<synchronous>, transform_indices = @transform_2, window_bounds = array<i64: 16, 33>}, {transform_indices = @transform_3, window_bounds = array<i64: 16, 512>}]} {
    %c0 = arith.constant 0 : index
    %c0_0 = arith.constant 0 : index
    %0 = vector.load %arg1[%c0, %c0_0] : memref<16x512xbf16, #tpu.memory_space<vmem>>, vector<16x512xbf16>
    %c0_1 = arith.constant 0 : index
    %c0_2 = arith.constant 0 : index
    %1 = vector.load %arg2[%c0_1, %c0_2] : memref<32x27xbf16, #tpu.memory_space<vmem>>, vector<32x16xbf16>
    %c0_3 = arith.constant 0 : index
    %c25 = arith.constant 25 : index
    %2 = vector.load %arg2[%c0_3, %c25] : memref<32x27xbf16, #tpu.memory_space<vmem>>, vector<32x1xbf16>
    %3 = arith.extf %2 : vector<32x1xbf16> to vector<32x1xf32>
    %c0_4 = arith.constant 0 : index
    %c26 = arith.constant 26 : index
    %4 = vector.load %arg2[%c0_4, %c26] : memref<32x27xbf16, #tpu.memory_space<vmem>>, vector<32x1xbf16>
    %5 = arith.extf %4 : vector<32x1xbf16> to vector<32x1xf32>
    %cst = arith.constant dense<0.000000e+00> : vector<32x512xf32>
    %6 = tpu.matmul %1, %0, %cst {dimension_numbers = #tpu.dot_dimension_numbers<[1], [0], [0], [1], [0, 0, 1, 1], [], []>} : vector<32x16xbf16>, vector<16x512xbf16>, vector<32x512xf32> -> vector<32x512xf32>
    %7 = vector.broadcast %3 : vector<32x1xf32> to vector<32x512xf32>
    %8 = arith.addf %6, %7 : vector<32x512xf32>
    %cst_5 = arith.constant 0.000000e+00 : f32
    %cst_6 = arith.constant 6.000000e+00 : f32
    %9 = vector.broadcast %cst_5 : f32 to vector<32x512xf32>
    %10 = arith.maximumf %9, %8 : vector<32x512xf32>
    %11 = vector.broadcast %cst_6 : f32 to vector<32x512xf32>
    %12 = arith.minimumf %11, %10 : vector<32x512xf32>
    %13 = tpu.iota {dimensions = array<i32: 1>} : vector<1x512xi32>
    %c16_i32 = arith.constant 16 : i32
    %c0_i32 = arith.constant 0 : i32
    %14 = arith.cmpi eq, %c16_i32, %c0_i32 : i32
    %c1_i32 = arith.constant 1 : i32
    %15 = arith.select %14, %c1_i32, %c16_i32 : i32
    %16 = vector.broadcast %15 : i32 to vector<1x512xi32>
    %17 = arith.remsi %13, %16 : vector<1x512xi32>
    %c0_i32_7 = arith.constant 0 : i32
    %18 = vector.broadcast %c0_i32_7 : i32 to vector<1x512xi32>
    %19 = arith.cmpi ne, %17, %18 : vector<1x512xi32>
    %c0_i32_8 = arith.constant 0 : i32
    %20 = vector.broadcast %c0_i32_8 : i32 to vector<1x512xi32>
    %21 = arith.cmpi slt, %17, %20 : vector<1x512xi32>
    %c0_i32_9 = arith.constant 0 : i32
    %22 = arith.cmpi slt, %15, %c0_i32_9 : i32
    %23 = vector.broadcast %22 : i1 to vector<1x512xi1>
    %24 = vector.broadcast %23 : vector<1x512xi1> to vector<1x512xi1>
    %25 = arith.xori %21, %24 : vector<1x512xi1>
    %26 = arith.andi %25, %19 : vector<1x512xi1>
    %27 = vector.broadcast %15 : i32 to vector<1x512xi32>
    %28 = arith.addi %17, %27 : vector<1x512xi32>
    %29 = arith.select %26, %28, %17 : vector<1x512xi1>, vector<1x512xi32>
    %c256_i32 = arith.constant 256 : i32
    %c0_i32_10 = arith.constant 0 : i32
    %30 = arith.cmpi eq, %c256_i32, %c0_i32_10 : i32
    %c1_i32_11 = arith.constant 1 : i32
    %31 = arith.select %30, %c1_i32_11, %c256_i32 : i32
    %32 = vector.broadcast %31 : i32 to vector<1x512xi32>
    %33 = arith.remsi %13, %32 : vector<1x512xi32>
    %c0_i32_12 = arith.constant 0 : i32
    %34 = vector.broadcast %c0_i32_12 : i32 to vector<1x512xi32>
    %35 = arith.cmpi ne, %33, %34 : vector<1x512xi32>
    %c0_i32_13 = arith.constant 0 : i32
    %36 = vector.broadcast %c0_i32_13 : i32 to vector<1x512xi32>
    %37 = arith.cmpi slt, %33, %36 : vector<1x512xi32>
    %c0_i32_14 = arith.constant 0 : i32
    %38 = arith.cmpi slt, %31, %c0_i32_14 : i32
    %39 = vector.broadcast %38 : i1 to vector<1x512xi1>
    %40 = vector.broadcast %39 : vector<1x512xi1> to vector<1x512xi1>
    %41 = arith.xori %37, %40 : vector<1x512xi1>
    %42 = arith.andi %41, %35 : vector<1x512xi1>
    %43 = vector.broadcast %31 : i32 to vector<1x512xi32>
    %44 = arith.addi %33, %43 : vector<1x512xi32>
    %45 = arith.select %42, %44, %33 : vector<1x512xi1>, vector<1x512xi32>
    %c0_i32_15 = arith.constant 0 : i32
    %46 = vector.broadcast %c0_i32_15 : i32 to vector<1x512xi32>
    %47 = arith.cmpi ne, %29, %46 : vector<1x512xi32>
    %c15_i32 = arith.constant 15 : i32
    %48 = vector.broadcast %c15_i32 : i32 to vector<1x512xi32>
    %49 = arith.cmpi ne, %29, %48 : vector<1x512xi32>
    %c16_i32_16 = arith.constant 16 : i32
    %50 = vector.broadcast %c16_i32_16 : i32 to vector<1x512xi32>
    %51 = arith.cmpi sge, %45, %50 : vector<1x512xi32>
    %c240_i32 = arith.constant 240 : i32
    %52 = vector.broadcast %c240_i32 : i32 to vector<1x512xi32>
    %53 = arith.cmpi slt, %45, %52 : vector<1x512xi32>
    %c0_17 = arith.constant 0 : index
    %c20 = arith.constant 20 : index
    %54 = vector.load %arg2[%c0_17, %c20] : memref<32x27xbf16, #tpu.memory_space<vmem>>, vector<32x1xbf16>
    %55 = arith.extf %54 : vector<32x1xbf16> to vector<32x1xf32>
    %56 = vector.broadcast %55 : vector<32x1xf32> to vector<32x512xf32>
    %57 = arith.mulf %12, %56 : vector<32x512xf32>
    %58 = vector.broadcast %5 : vector<32x1xf32> to vector<32x512xf32>
    %59 = arith.addf %57, %58 : vector<32x512xf32>
    %c17_i32 = arith.constant 17 : i32
    %60 = tpu.dynamic_rotate %12 by %c17_i32 dim 1 : vector<32x512xf32>, i32 -> vector<32x512xf32>
    %61 = arith.andi %51, %47 : vector<1x512xi1>
    %cst_18 = arith.constant 0.000000e+00 : f32
    %62 = vector.shape_cast %61 : vector<1x512xi1> to vector<1x512xi1>
    %63 = vector.broadcast %62 : vector<1x512xi1> to vector<32x512xi1>
    %64 = vector.broadcast %cst_18 : f32 to vector<32x512xf32>
    %65 = arith.select %63, %60, %64 : vector<32x512xi1>, vector<32x512xf32>
    %c0_19 = arith.constant 0 : index
    %c16 = arith.constant 16 : index
    %66 = vector.load %arg2[%c0_19, %c16] : memref<32x27xbf16, #tpu.memory_space<vmem>>, vector<32x1xbf16>
    %67 = arith.extf %66 : vector<32x1xbf16> to vector<32x1xf32>
    %68 = vector.broadcast %67 : vector<32x1xf32> to vector<32x512xf32>
    %69 = arith.mulf %65, %68 : vector<32x512xf32>
    %70 = arith.addf %59, %69 : vector<32x512xf32>
    %c16_i32_20 = arith.constant 16 : i32
    %71 = tpu.dynamic_rotate %12 by %c16_i32_20 dim 1 : vector<32x512xf32>, i32 -> vector<32x512xf32>
    %cst_21 = arith.constant 0.000000e+00 : f32
    %72 = vector.shape_cast %51 : vector<1x512xi1> to vector<1x512xi1>
    %73 = vector.broadcast %72 : vector<1x512xi1> to vector<32x512xi1>
    %74 = vector.broadcast %cst_21 : f32 to vector<32x512xf32>
    %75 = arith.select %73, %71, %74 : vector<32x512xi1>, vector<32x512xf32>
    %c0_22 = arith.constant 0 : index
    %c17 = arith.constant 17 : index
    %76 = vector.load %arg2[%c0_22, %c17] : memref<32x27xbf16, #tpu.memory_space<vmem>>, vector<32x1xbf16>
    %77 = arith.extf %76 : vector<32x1xbf16> to vector<32x1xf32>
    %78 = vector.broadcast %77 : vector<32x1xf32> to vector<32x512xf32>
    %79 = arith.mulf %75, %78 : vector<32x512xf32>
    %80 = arith.addf %70, %79 : vector<32x512xf32>
    %c15_i32_23 = arith.constant 15 : i32
    %81 = tpu.dynamic_rotate %12 by %c15_i32_23 dim 1 : vector<32x512xf32>, i32 -> vector<32x512xf32>
    %82 = arith.andi %51, %49 : vector<1x512xi1>
    %cst_24 = arith.constant 0.000000e+00 : f32
    %83 = vector.shape_cast %82 : vector<1x512xi1> to vector<1x512xi1>
    %84 = vector.broadcast %83 : vector<1x512xi1> to vector<32x512xi1>
    %85 = vector.broadcast %cst_24 : f32 to vector<32x512xf32>
    %86 = arith.select %84, %81, %85 : vector<32x512xi1>, vector<32x512xf32>
    %c0_25 = arith.constant 0 : index
    %c18 = arith.constant 18 : index
    %87 = vector.load %arg2[%c0_25, %c18] : memref<32x27xbf16, #tpu.memory_space<vmem>>, vector<32x1xbf16>
    %88 = arith.extf %87 : vector<32x1xbf16> to vector<32x1xf32>
    %89 = vector.broadcast %88 : vector<32x1xf32> to vector<32x512xf32>
    %90 = arith.mulf %86, %89 : vector<32x512xf32>
    %91 = arith.addf %80, %90 : vector<32x512xf32>
    %c1_i32_26 = arith.constant 1 : i32
    %92 = tpu.dynamic_rotate %12 by %c1_i32_26 dim 1 : vector<32x512xf32>, i32 -> vector<32x512xf32>
    %cst_27 = arith.constant 0.000000e+00 : f32
    %93 = vector.shape_cast %47 : vector<1x512xi1> to vector<1x512xi1>
    %94 = vector.broadcast %93 : vector<1x512xi1> to vector<32x512xi1>
    %95 = vector.broadcast %cst_27 : f32 to vector<32x512xf32>
    %96 = arith.select %94, %92, %95 : vector<32x512xi1>, vector<32x512xf32>
    %c0_28 = arith.constant 0 : index
    %c19 = arith.constant 19 : index
    %97 = vector.load %arg2[%c0_28, %c19] : memref<32x27xbf16, #tpu.memory_space<vmem>>, vector<32x1xbf16>
    %98 = arith.extf %97 : vector<32x1xbf16> to vector<32x1xf32>
    %99 = vector.broadcast %98 : vector<32x1xf32> to vector<32x512xf32>
    %100 = arith.mulf %96, %99 : vector<32x512xf32>
    %101 = arith.addf %91, %100 : vector<32x512xf32>
    %c511_i32 = arith.constant 511 : i32
    %102 = tpu.dynamic_rotate %12 by %c511_i32 dim 1 : vector<32x512xf32>, i32 -> vector<32x512xf32>
    %cst_29 = arith.constant 0.000000e+00 : f32
    %103 = vector.shape_cast %49 : vector<1x512xi1> to vector<1x512xi1>
    %104 = vector.broadcast %103 : vector<1x512xi1> to vector<32x512xi1>
    %105 = vector.broadcast %cst_29 : f32 to vector<32x512xf32>
    %106 = arith.select %104, %102, %105 : vector<32x512xi1>, vector<32x512xf32>
    %c0_30 = arith.constant 0 : index
    %c21 = arith.constant 21 : index
    %107 = vector.load %arg2[%c0_30, %c21] : memref<32x27xbf16, #tpu.memory_space<vmem>>, vector<32x1xbf16>
    %108 = arith.extf %107 : vector<32x1xbf16> to vector<32x1xf32>
    %109 = vector.broadcast %108 : vector<32x1xf32> to vector<32x512xf32>
    %110 = arith.mulf %106, %109 : vector<32x512xf32>
    %111 = arith.addf %101, %110 : vector<32x512xf32>
    %c497_i32 = arith.constant 497 : i32
    %112 = tpu.dynamic_rotate %12 by %c497_i32 dim 1 : vector<32x512xf32>, i32 -> vector<32x512xf32>
    %113 = arith.andi %53, %47 : vector<1x512xi1>
    %cst_31 = arith.constant 0.000000e+00 : f32
    %114 = vector.shape_cast %113 : vector<1x512xi1> to vector<1x512xi1>
    %115 = vector.broadcast %114 : vector<1x512xi1> to vector<32x512xi1>
    %116 = vector.broadcast %cst_31 : f32 to vector<32x512xf32>
    %117 = arith.select %115, %112, %116 : vector<32x512xi1>, vector<32x512xf32>
    %c0_32 = arith.constant 0 : index
    %c22 = arith.constant 22 : index
    %118 = vector.load %arg2[%c0_32, %c22] : memref<32x27xbf16, #tpu.memory_space<vmem>>, vector<32x1xbf16>
    %119 = arith.extf %118 : vector<32x1xbf16> to vector<32x1xf32>
    %120 = vector.broadcast %119 : vector<32x1xf32> to vector<32x512xf32>
    %121 = arith.mulf %117, %120 : vector<32x512xf32>
    %122 = arith.addf %111, %121 : vector<32x512xf32>
    %c496_i32 = arith.constant 496 : i32
    %123 = tpu.dynamic_rotate %12 by %c496_i32 dim 1 : vector<32x512xf32>, i32 -> vector<32x512xf32>
    %cst_33 = arith.constant 0.000000e+00 : f32
    %124 = vector.shape_cast %53 : vector<1x512xi1> to vector<1x512xi1>
    %125 = vector.broadcast %124 : vector<1x512xi1> to vector<32x512xi1>
    %126 = vector.broadcast %cst_33 : f32 to vector<32x512xf32>
    %127 = arith.select %125, %123, %126 : vector<32x512xi1>, vector<32x512xf32>
    %c0_34 = arith.constant 0 : index
    %c23 = arith.constant 23 : index
    %128 = vector.load %arg2[%c0_34, %c23] : memref<32x27xbf16, #tpu.memory_space<vmem>>, vector<32x1xbf16>
    %129 = arith.extf %128 : vector<32x1xbf16> to vector<32x1xf32>
    %130 = vector.broadcast %129 : vector<32x1xf32> to vector<32x512xf32>
    %131 = arith.mulf %127, %130 : vector<32x512xf32>
    %132 = arith.addf %122, %131 : vector<32x512xf32>
    %c495_i32 = arith.constant 495 : i32
    %133 = tpu.dynamic_rotate %12 by %c495_i32 dim 1 : vector<32x512xf32>, i32 -> vector<32x512xf32>
    %134 = arith.andi %53, %49 : vector<1x512xi1>
    %cst_35 = arith.constant 0.000000e+00 : f32
    %135 = vector.shape_cast %134 : vector<1x512xi1> to vector<1x512xi1>
    %136 = vector.broadcast %135 : vector<1x512xi1> to vector<32x512xi1>
    %137 = vector.broadcast %cst_35 : f32 to vector<32x512xf32>
    %138 = arith.select %136, %133, %137 : vector<32x512xi1>, vector<32x512xf32>
    %c0_36 = arith.constant 0 : index
    %c24 = arith.constant 24 : index
    %139 = vector.load %arg2[%c0_36, %c24] : memref<32x27xbf16, #tpu.memory_space<vmem>>, vector<32x1xbf16>
    %140 = arith.extf %139 : vector<32x1xbf16> to vector<32x1xf32>
    %141 = vector.broadcast %140 : vector<32x1xf32> to vector<32x512xf32>
    %142 = arith.mulf %138, %141 : vector<32x512xf32>
    %143 = arith.addf %132, %142 : vector<32x512xf32>
    %cst_37 = arith.constant 0.000000e+00 : f32
    %144 = vector.broadcast %cst_37 : f32 to vector<32x512xf32>
    %145 = arith.maximumf %143, %144 : vector<32x512xf32>
    %c0_38 = arith.constant 0 : index
    %c0_39 = arith.constant 0 : index
    %146 = vector.load %arg3[%c0_38, %c0_39] : memref<16x33xbf16, #tpu.memory_space<vmem>>, vector<16x32xbf16>
    %c0_40 = arith.constant 0 : index
    %c32 = arith.constant 32 : index
    %147 = vector.load %arg3[%c0_40, %c32] : memref<16x33xbf16, #tpu.memory_space<vmem>>, vector<16x1xbf16>
    %148 = arith.extf %147 : vector<16x1xbf16> to vector<16x1xf32>
    %149 = arith.truncf %145 : vector<32x512xf32> to vector<32x512xbf16>
    %cst_41 = arith.constant dense<0.000000e+00> : vector<16x512xf32>
    %150 = tpu.matmul %146, %149, %cst_41 {dimension_numbers = #tpu.dot_dimension_numbers<[1], [0], [0], [1], [0, 0, 1, 1], [], []>} : vector<16x32xbf16>, vector<32x512xbf16>, vector<16x512xf32> -> vector<16x512xf32>
    %151 = vector.broadcast %148 : vector<16x1xf32> to vector<16x512xf32>
    %152 = arith.addf %150, %151 : vector<16x512xf32>
    %153 = arith.extf %0 : vector<16x512xbf16> to vector<16x512xf32>
    %154 = arith.addf %152, %153 : vector<16x512xf32>
    %cst_42 = arith.constant 0.000000e+00 : f32
    %cst_43 = arith.constant 6.000000e+00 : f32
    %155 = vector.broadcast %cst_42 : f32 to vector<16x512xf32>
    %156 = arith.maximumf %155, %154 : vector<16x512xf32>
    %157 = vector.broadcast %cst_43 : f32 to vector<16x512xf32>
    %158 = arith.minimumf %157, %156 : vector<16x512xf32>
    %159 = arith.truncf %158 : vector<16x512xf32> to vector<16x512xbf16>
    %c0_44 = arith.constant 0 : index
    %c0_45 = arith.constant 0 : index
    %160 = vector.load %arg4[%c0_44, %c0_45] : memref<16x512xbf16, #tpu.memory_space<vmem>>, vector<16x512xbf16>
    tpu.vector_store %arg4[%c0_44, %c0_45], %159 {strides = array<i32>} : memref<16x512xbf16, #tpu.memory_space<vmem>>, vector<16x512xbf16>,
    return
  }
  func.func @transform_0(%arg0: i32) -> (i32, i32) {
    %c0_i32 = arith.constant 0 : i32
    %c0_i32_0 = arith.constant 0 : i32
    return %c0_i32, %arg0 : i32, i32
  }
  func.func @transform_1(%arg0: i32) -> (i32, i32) {
    %c0_i32 = arith.constant 0 : i32
    %c0_i32_0 = arith.constant 0 : i32
    %c0_i32_1 = arith.constant 0 : i32
    return %c0_i32, %c0_i32_0 : i32, i32
  }
  func.func @transform_2(%arg0: i32) -> (i32, i32) {
    %c0_i32 = arith.constant 0 : i32
    %c0_i32_0 = arith.constant 0 : i32
    %c0_i32_1 = arith.constant 0 : i32
    return %c0_i32, %c0_i32_0 : i32, i32
  }
  func.func @transform_3(%arg0: i32) -> (i32, i32) {
    %c0_i32 = arith.constant 0 : i32
    %c0_i32_0 = arith.constant 0 : i32
    return %c0_i32, %arg0 : i32, i32
  }
}

</mosaic_0001>

<bundles_post_ra>
// kernel: tpu_custom_call.1
= control target key start
LH: loop header
LB: loop body
LE: loop exit
PB: predicated region body
PF: predicated region fallthrough
CT: control target
= control target key end

     0   :  { %8 = vsyncpa [#allocation3], 0  ;;  %s3574_s0 = inlined_call_operand.hbm [shape: bf16[16,512], index: 0, kind: input, shape index: {}]   ;;  %s3575_s1 = inlined_call_operand.hbm [shape: bf16[32,27], index: 1, kind: input, shape index: {}]   ;;  %s3576_s2 = inlined_call_operand.hbm [shape: bf16[16,33], index: 2, kind: input, shape index: {}]   ;;  %s3577_s3 = inlined_call_operand.hbm [shape: bf16[16,512], index: 3, kind: output, shape index: {}]  }
   0x1   :  { %9 = vsyncpa [#allocation6], 0 }
   0x2   :  { %10 = vsyncpa [#allocation4], 0  ;;  %s1924_s12 = smov [#allocation5]  }
   0x3   :  { %s28_s13 = sshll.u32 %s1924_s12, 4  ;;  %s29_s13 = int_to_ptr.vmem [resolvable:$true] %s28_s13 }
   0x4   :  { %s1846_s14 = scalar_lea.vmem %s29_s13, 256  ;;  %p1851_p1 = scmp.lt.s32.totalorder %s29_s13, %s29_s13 }
   0x5   :  { %p1847_p0 = scmp.ne.s32.totalorder %s29_s13, %s1846_s14  ;;  %p1852_p2 = scmp.lt.s32.totalorder %s1846_s14, %s1846_s14 }
   0x7   :  { %p1853_p3 = por %p1852_p2, %p1851_p1 }
   0x9   :  { %p1854_p4 = pnand %p1853_p3, %p1847_p0 }
   0xb   :  { %1857 = shalt.err (!%p1854_p4)
}
   0xc   :  { %s1925_s15 = smov 64   ;;  %s1926_s16 = smov 4  }
   0xd   :  { %34 = dma.hbm_to_vmem [thread:$0]  %s3575_s1, 256, %s29_s13, [#allocation6], %s1925_s15, %s1925_s15, %s1926_s16  }
   0xe   :  { %s1927_s19 = smov [#allocation2]  }
   0xf   :  { %s16_s20 = sshll.u32 %s1927_s19, 4  ;;  %s17_s20 = int_to_ptr.vmem [resolvable:$true] %s16_s20 }
  0x10   :  { %s1866_s21 = scalar_lea.vmem %s17_s20, 512  ;;  %p1871_p6 = scmp.lt.s32.totalorder %s17_s20, %s17_s20 }
  0x11   :  { %p1867_p5 = scmp.ne.s32.totalorder %s17_s20, %s1866_s21  ;;  %p1872_p7 = scmp.lt.s32.totalorder %s1866_s21, %s1866_s21 }
  0x13   :  { %p1873_p8 = por %p1872_p7, %p1871_p6 }
  0x15   :  { %p1874_p9 = pnand %p1873_p8, %p1867_p5 }
  0x17   :  { %1877 = shalt.err (!%p1874_p9)
}
  0x18   :  { %s1928_s22 = smov 256   ;;  %s1929_s23 = smov 16  }
  0x19   :  { %22 = dma.hbm_to_vmem [thread:$0]  %s3574_s0, 512, %s17_s20, [#allocation3], %s1928_s22, %s1928_s22, %s1929_s23  }
  0x1a   :  { %s1930_s1 = smov [#allocation7]  }
  0x1b   :  { %s40_s26 = sshll.u32 %s1930_s1, 4  ;;  %s41_s26 = int_to_ptr.vmem [resolvable:$true] %s40_s26 }
  0x1c   :  { %s1886_s27 = scalar_lea.vmem %s41_s26, 128  ;;  %p1891_p11 = scmp.lt.s32.totalorder %s41_s26, %s41_s26 }
  0x1d   :  { %p1887_p10 = scmp.ne.s32.totalorder %s41_s26, %s1886_s27  ;;  %p1892_p12 = scmp.lt.s32.totalorder %s1886_s27, %s1886_s27 }
  0x1f   :  { %p1893_p13 = por %p1892_p12, %p1891_p11 }
  0x21   :  { %p1894_p0 = pnand %p1893_p13, %p1887_p10 }
  0x23   :  { %1897 = shalt.err (!%p1894_p0)
}
  0x24   :  { %46 = dma.hbm_to_vmem [thread:$0]  %s3576_s2, 128, %s41_s26, [#allocation6], %s1925_s15, %s1925_s15, %s1926_s16  }
  0x25   :  { %1918 = dma.done.wait [#allocation3], 512  }
  0x26   :  { %1919 = vsyncadd [#allocation3], 4294966784 }
  0x27   :  { %1920 = dma.done.wait [#allocation6], 384  }
  0x28   :  { %1921 = vsyncadd [#allocation6], 4294966912  ;;  %v1931_v0 = vmov 0   ;;  %v1932_v1 = vmov 25   ;;  %v1933_v2 = vmov 20   ;;  %v57_v3 = vld [vmem:[#allocation2] sm:$0xff] }
  0x29   :  { %158 = vmatprep.mubr.bf16.mxu0 %v1931_v0  ;;  %211 = vmatprep.mubr.bf16.mxu1 %v1931_v0  ;;  %v59_v4 = vld [vmem:[#allocation2 + $0x10] sm:$0xff]  ;;  %v58_v5 = vld [vmem:[#allocation2 + $0x8] sm:$0xff]  ;;  %v60_v7 = vld [vmem:[#allocation2 + $0x18] sm:$0xff]  ;;  %vm119_vm0 = vcmask 130048   ;;  %v1934_v19 = vmov 26   ;;  %v1935_v20 = vmov 16  }
  0x2a   :  { %1689 = vset.pattern.permute.xlu0 %v1932_v1  ;;  %1700 = vset.pattern.permute.xlu1 %v1933_v2  ;;  %v1643_v6 = vcombine.high %v57_v3, %v59_v4  ;;  %v61_v8 = vld [vmem:[#allocation5] sm:$0xff]   ;;  %v1645_v9 = vcombine.high %v58_v5, %v60_v7  ;;  %v1642_v10 = vcombine.low %v57_v3, %v59_v4  ;;  %v63_v12 = vld [vmem:[#allocation5 + $0x8] sm:$0xff]   ;;  %v1936_v21 = vmov 17   ;;  %s1942_s0 = smov 17   ;;  %s1943_s2 = smov 15  }
  0x2b   :  { %v1644_v11 = vcombine.low %v58_v5, %v60_v7  ;;  %v65_v13 = vunpack.c.l.bf16 %v61_v8  ;;  %v66_v14 = vunpack.c.h.bf16 %v61_v8  ;;  %v67_v15 = vunpack.c.l.bf16 %v63_v12  ;;  %s1944_s30 = smov 127   ;;  %s1945_s4 = smov 1  }
  0x2c   :  { %140 = vmatprep.subr.bf16.mxu0 %v1643_v6  ;;  %193 = vmatprep.subr.bf16.mxu1 %v1645_v9  ;;  %v68_v16 = vunpack.c.h.bf16 %v63_v12  ;;  %v1937_v22 = vmov 19   ;;  %v1938_v23 = vmov 18   ;;  %v1939_v24 = vmov 21   ;;  %s1946_s5 = smov 113   ;;  %s1947_s6 = smov 112  }
  0x2d   :  { %141 = vmatpush1.bf16.msra.mxu0 %v1642_v10  ;;  %194 = vmatpush1.bf16.msra.mxu1 %v1644_v11  ;;  %v1984_v17 = vpack.i.bf16 %v66_v14, %v65_v13  ;;  %v1940_v25 = vmov 22   ;;  %v1941_v26 = vmov 23   ;;  %s1949_s7 = smov 111   ;;  %s1951_s8 = smov [#allocation8]  }
  0x2e   :  { %v1988_v18 = vpack.i.bf16 %v68_v16, %v67_v15  ;;  %s1627_s9 = sshll.u32 %s1951_s8, 4  ;;  %s1628_s9 = int_to_ptr.vmem [resolvable:$true] %s1627_s9 }
  0x2f   :  { %1691 = vperm.xlu0 %1689, %v1984_v17   ;;  %1702 = vperm.xlu1 %1700, %v1984_v17   ;;  %s1898_s10 = scalar_lea.vmem %s1628_s9, 512  ;;  %p1903_p2 = scmp.lt.s32.totalorder %s1628_s9, %s1628_s9 }
  0x30   :  { %1646 = vmatmul.mubr.msk.bf16.vlgmr.msra.gmra.mxu0 %vm119_vm0, %v61_v8  ;;  %1648 = vmatmul.mubr.msk.bf16.vlgmr.msra.gmra.mxu1 %vm119_vm0, %v61_v8  ;;  %p1899_p1 = scmp.ne.s32.totalorder %s1628_s9, %s1898_s10  ;;  %p1904_p3 = scmp.lt.s32.totalorder %s1898_s10, %s1898_s10 }
  0x31   :  { %168 = vmatprep.mubr.bf16.mxu0 %v1931_v0  ;;  %221 = vmatprep.mubr.bf16.mxu1 %v1931_v0 }
  0x32   :  { %p1905_p4 = por %p1904_p3, %p1903_p2 }
  0x33   :  { %1696 = vperm.xlu0 %1689, %v1988_v18   ;;  %1707 = vperm.xlu1 %1700, %v1988_v18  }
  0x34   :  { %p1906_p5 = pnand %p1905_p4, %p1899_p1 }
  0x37   :  { %1711 = vset.pattern.permute.xlu0 %v1934_v19  ;;  %1717 = vset.pattern.permute.xlu1 %v1934_v19 }
  0x38   :  { %1647 = vmatmul.mubr.msk.bf16.gmra.mxu0 %vm119_vm0, %v63_v12  ;;  %1649 = vmatmul.mubr.msk.bf16.gmra.mxu1 %vm119_vm0, %v63_v12 }
  0x39   :  { %1713 = vperm.xlu0 %1711, %v1984_v17   ;;  %1508 = vmatprep.mubr.bf16.mxu0 %v1931_v0 }
  0x3a   :  { %1719 = vperm.xlu1 %1717, %v1988_v18   ;;  %1551 = vmatprep.mubr.bf16.mxu1 %v1931_v0 }
  0x3d   :  { %1729 = vset.pattern.permute.xlu0 %v1935_v20 }
  0x3e   :  { %1731 = vperm.xlu0 %1729, %v1988_v18   ;;  %1723 = vset.pattern.permute.xlu1 %v1935_v20 }
  0x3f   :  { %1725 = vperm.xlu1 %1723, %v1984_v17  }
  0x42   :  { %1735 = vset.pattern.permute.xlu0 %v1936_v21 }
  0x43   :  { %1737 = vperm.xlu0 %1735, %v1984_v17   ;;  %1741 = vset.pattern.permute.xlu1 %v1936_v21 }
  0x44   :  { %1743 = vperm.xlu1 %1741, %v1988_v18  }
  0x47   :  { %1753 = vset.pattern.permute.xlu0 %v1937_v22 }
  0x48   :  { %1755 = vperm.xlu0 %1753, %v1988_v18   ;;  %1747 = vset.pattern.permute.xlu1 %v1938_v23 }
  0x49   :  { %1749 = vperm.xlu1 %1747, %v1988_v18  }
  0x4c   :  { %1759 = vset.pattern.permute.xlu0 %v1938_v23 }
  0x4d   :  { %1761 = vperm.xlu0 %1759, %v1984_v17   ;;  %1765 = vset.pattern.permute.xlu1 %v1939_v24 }
  0x4e   :  { %1767 = vperm.xlu1 %1765, %v1988_v18  }
  0x51   :  { %1777 = vset.pattern.permute.xlu0 %v1940_v25 }
  0x52   :  { %1779 = vperm.xlu0 %1777, %v1988_v18   ;;  %1771 = vset.pattern.permute.xlu1 %v1937_v22 }
  0x53   :  { %1773 = vperm.xlu1 %1771, %v1984_v17  }
  0x56   :  { %1783 = vset.pattern.permute.xlu0 %v1939_v24 }
  0x57   :  { %1785 = vperm.xlu0 %1783, %v1984_v17   ;;  %1789 = vset.pattern.permute.xlu1 %v1941_v26 }
  0x58   :  { %1791 = vperm.xlu1 %1789, %v1988_v18  }
  0x5b   :  { %1801 = vset.pattern.permute.xlu0 %v1941_v26 }
  0x5c   :  { %1795 = vset.pattern.permute.xlu1 %v1940_v25 }
  0x5d   :  { %1797 = vperm.xlu1 %1795, %v1984_v17  }
  0xaa   :  { %v1692_v27 = vpop.permute.xlu0 %1691  ;;  %v2087_v1 = vpop.permute.xlu1 %1702 }
  0xab   :  { %v1693_v28 = vunpack.i.l.bf16 %v1692_v27  ;;  %v1694_v46 = vunpack.i.h.bf16 %v1692_v27  ;;  %3694 = vst [vmem:[#allocation14_spill] sm:$0xff] %v2087_v1 }
  0xae   :  { %v1697_v61 = vpop.permute.xlu0 %1696  ;;  %v2093_v4 = vpop.permute.xlu1 %1707 }
  0xaf   :  { %v1698_v0 = vunpack.i.l.bf16 %v1697_v61  ;;  %3695 = vst [vmem:[#allocation15_spill] sm:$0xff] %v2093_v4 }
  0xb4   :  { %v2115_v12 = vpop.permute.xlu0 %1713 }
  0xb5   :  { %v2101_v9 = vpop.permute.xlu1 %1719  ;;  %3698 = vst [vmem:[#allocation18_spill] sm:$0xff] %v2115_v12 }
  0xb6   :  { %3696 = vst [vmem:[#allocation16_spill] sm:$0xff] %v2101_v9 }
  0xb9   :  { %v2123_v16 = vpop.permute.xlu0 %1731 }
  0xba   :  { %v2111_v11 = vpop.permute.xlu1 %1725  ;;  %3700 = vst [vmem:[#allocation20_spill] sm:$0xff] %v2123_v16 }
  0xbb   :  { %3697 = vst [vmem:[#allocation17_spill] sm:$0xff] %v2111_v11 }
  0xbe   :  { %v2135_v23 = vpop.permute.xlu0 %1737 }
  0xbf   :  { %v2121_v14 = vpop.permute.xlu1 %1743  ;;  %3702 = vst [vmem:[#allocation22_spill] sm:$0xff] %v2135_v23 }
  0xc0   :  { %3699 = vst [vmem:[#allocation19_spill] sm:$0xff] %v2121_v14 }
  0xc4   :  { %v2131_v22 = vpop.permute.xlu1 %1749 }
  0xc5   :  { %3701 = vst [vmem:[#allocation21_spill] sm:$0xff] %v2131_v22 }
  0xc9   :  { %v2143_v26 = vpop.permute.xlu1 %1767 }
  0xca   :  { %3703 = vst [vmem:[#allocation23_spill] sm:$0xff] %v2143_v26 }
  0xf0   :  { %v160_v29 = vpop.f32.mrf.mxu0  ;;  %v213_v31 = vpop.f32.mrf.mxu1 }
  0xf1   :  { %v161_v30 = vadd.f32 %v1693_v28, %v160_v29  ;;  %v214_v32 = vadd.f32 %v1693_v28, %v213_v31  ;;  %v2155_v29 = vpop.permute.xlu1 %1773 }
  0xf2   :  { %v162_v37 = vpop.f32.mrf.mxu0  ;;  %v215_v39 = vpop.f32.mrf.mxu1  ;;  %3705 = vst [vmem:[#allocation25_spill] sm:$0xff] %v2155_v29 }
  0xf3   :  { %v232_v33 = vmax.f32 %v161_v30, 0.0  ;;  %v234_v34 = vmax.f32 %v214_v32, 0.0  ;;  %v163_v38 = vadd.f32 %v1693_v28, %v162_v37  ;;  %v216_v41 = vadd.f32 %v1693_v28, %v215_v39  ;;  %v2147_v28 = vpop.permute.xlu0 %1755 }
  0xf4   :  { %v164_v45 = vpop.f32.mrf.mxu0  ;;  %v217_v48 = vpop.f32.mrf.mxu1  ;;  %3704 = vst [vmem:[#allocation24_spill] sm:$0xff] %v2147_v28  ;;  %v1699_v32 = vunpack.i.h.bf16 %v1697_v61  ;;  %v1948_v28 = vmov 24  }
  0xf5   :  { %v2011_v35 = vmin.f32 %v232_v33, 6.0  ;;  %v2013_v36 = vmin.f32 %v234_v34, 6.0  ;;  %v233_v40 = vmax.f32 %v163_v38, 0.0  ;;  %v235_v43 = vmax.f32 %v216_v41, 0.0  ;;  %v2165_v33 = vpop.permute.xlu1 %1791 }
  0xf6   :  { %v165_v47 = vadd.f32 %v1694_v46, %v164_v45  ;;  %v218_v50 = vadd.f32 %v1694_v46, %v217_v48  ;;  %v166_v54 = vpop.f32.mrf.mxu0  ;;  %v219_v56 = vpop.f32.mrf.mxu1  ;;  %3707 = vst [vmem:[#allocation27_spill] sm:$0xff] %v2165_v33 }
  0xf7   :  { %445 = vrot.lane.b32.xlu1 %v2011_v35, %s1942_s0  ;;  %586 = vrot.lane.b32.xlu0 %v2013_v36, %s1929_s23  ;;  %v2027_v42 = vmin.f32 %v233_v40, 6.0  ;;  %v2033_v44 = vmin.f32 %v235_v43, 6.0  ;;  %v167_v55 = vadd.f32 %v1694_v46, %v166_v54  ;;  %v220_v58 = vadd.f32 %v1694_v46, %v219_v56  ;;  %v2159_v30 = vpop.permute.xlu0 %1761 }
  0xf8   :  { %v236_v49 = vmax.f32 %v165_v47, 0.0  ;;  %v238_v52 = vmax.f32 %v218_v50, 0.0  ;;  %v170_v63 = vpop.f32.mrf.mxu0  ;;  %v223_v3 = vpop.f32.mrf.mxu1  ;;  %3706 = vst [vmem:[#allocation26_spill] sm:$0xff] %v2159_v30 }
  0xf9   :  { %3692 = vst [vmem:[#allocation12_spill] sm:$0xff] %v2027_v42  ;;  %v237_v57 = vmax.f32 %v167_v55, 0.0  ;;  %v239_v60 = vmax.f32 %v220_v58, 0.0  ;;  %v171_v2 = vadd.f32 %v1698_v0, %v170_v63  ;;  %v224_v6 = vadd.f32 %v1698_v0, %v223_v3  ;;  %v2175_v41 = vpop.permute.xlu1 %1797 }
  0xfa   :  { %v2055_v51 = vmin.f32 %v236_v49, 6.0  ;;  %v2061_v53 = vmin.f32 %v238_v52, 6.0  ;;  %v172_v13 = vpop.f32.mrf.mxu0  ;;  %v225_v19 = vpop.f32.mrf.mxu1  ;;  %3709 = vst [vmem:[#allocation29_spill] sm:$0xff] %v2175_v41 }
  0xfb   :  { %461 = vrot.lane.b32.xlu1 %v2013_v36, %s1942_s0  ;;  %707 = vrot.lane.b32.xlu0 %v2013_v36, %s1943_s2  ;;  %v2075_v59 = vmin.f32 %v237_v57, 6.0  ;;  %v2081_v62 = vmin.f32 %v239_v60, 6.0  ;;  %v240_v5 = vmax.f32 %v171_v2, 0.0  ;;  %v242_v8 = vmax.f32 %v224_v6, 0.0  ;;  %v2167_v37 = vpop.permute.xlu0 %1779 }
  0xfc   :  { %3693 = vst [vmem:[#allocation13_spill] sm:$0xff] %v2061_v53  ;;  %v173_v15 = vadd.f32 %v1698_v0, %v172_v13  ;;  %v226_v21 = vadd.f32 %v1698_v0, %v225_v19  ;;  %v174_v31 = vpop.f32.mrf.mxu0  ;;  %3708 = vst [vmem:[#allocation28_spill] sm:$0xff] %v2167_v37  ;;  %v227_v38 = vpop.f32.mrf.mxu1 }
  0xfd   :  { %v2099_v7 = vmin.f32 %v240_v5, 6.0  ;;  %v2107_v10 = vmin.f32 %v242_v8, 6.0  ;;  %v175_v34 = vadd.f32 %v1699_v32, %v174_v31  ;;  %v228_v40 = vadd.f32 %v1699_v32, %v227_v38 }
  0xfe   :  { %v241_v20 = vmax.f32 %v173_v15, 0.0  ;;  %v243_v25 = vmax.f32 %v226_v21, 0.0  ;;  %v176_v56 = vpop.f32.mrf.mxu0  ;;  %v229_v61 = vpop.f32.mrf.mxu1 }
  0xff   :  { %570 = vrot.lane.b32.xlu1 %v2011_v35, %s1929_s23  ;;  %953 = vrot.lane.b32.xlu0 %v2013_v36, %s1944_s30  ;;  %v244_v39 = vmax.f32 %v175_v34, 0.0  ;;  %v2179_v43 = vpop.permute.xlu0 %1785  ;;  %v246_v46 = vmax.f32 %v228_v40, 0.0  ;;  %v177_v58 = vadd.f32 %v1699_v32, %v176_v56  ;;  %v230_v2 = vadd.f32 %v1699_v32, %v229_v61 }
 0x100   :  { %v2137_v24 = vmin.f32 %v241_v20, 6.0  ;;  %v2145_v27 = vmin.f32 %v243_v25, 6.0  ;;  %3710 = vst [vmem:[#allocation30_spill] sm:$0xff] %v2179_v43  ;;  %v264_v61 = vlaneseq }
 0x101   :  { %v2181_v45 = vmin.f32 %v244_v39, 6.0  ;;  %v2189_v48 = vmin.f32 %v246_v46, 6.0  ;;  %v245_v0 = vmax.f32 %v177_v58, 0.0  ;;  %v247_v8 = vmax.f32 %v230_v2, 0.0 }
 0x103   :  { %691 = vrot.lane.b32.xlu1 %v2011_v35, %s1943_s2  ;;  %578 = vrot.lane.b32.xlu0 %v2027_v42, %s1929_s23  ;;  %3711 = vst [vmem:[#allocation31_spill] sm:$0xff] %v2181_v45  ;;  %v2231_v6 = vmin.f32 %v245_v0, 6.0  ;;  %v2241_v19 = vmin.f32 %v247_v8, 6.0  ;;  %v2295_v8 = vand.u32 127, %v264_v61  ;;  %v1705_v61 = vunpack.i.h.bf16 %v2087_v1 }
 0x105   :  { %vm3623_vm2 = vcmp.lt.s32.totalorder %v2295_v8, 17  ;;  %v402_v1 = vmul.f32 %v1705_v61, %v2075_v59  ;;  %v403_v37 = vmul.f32 %v1705_v61, %v2061_v53  ;;  %vm3629_vm9 = vcmp.lt.s32.totalorder %v2295_v8, 16 }
 0x106   :  { %vm3625_vm10 = vcmp.lt.s32.totalorder %v2295_v8, 15  ;;  %vm3624_vm15 = vcmp.lt.s32.totalorder %v2295_v8, 1 }
 0x107   :  { %816 = vrot.lane.b32.xlu1 %v2011_v35, %s1945_s4  ;;  %594 = vrot.lane.b32.xlu0 %v2033_v44, %s1929_s23 }
 0x10b   :  { %832 = vrot.lane.b32.xlu1 %v2013_v36, %s1945_s4  ;;  %699 = vrot.lane.b32.xlu0 %v2027_v42, %s1943_s2 }
 0x10f   :  { %937 = vrot.lane.b32.xlu1 %v2011_v35, %s1944_s30  ;;  %715 = vrot.lane.b32.xlu0 %v2033_v44, %s1943_s2 }
 0x113   :  { %453 = vrot.lane.b32.xlu1 %v2027_v42, %s1942_s0  ;;  %945 = vrot.lane.b32.xlu0 %v2027_v42, %s1944_s30 }
 0x117   :  { %469 = vrot.lane.b32.xlu1 %v2033_v44, %s1942_s0  ;;  %961 = vrot.lane.b32.xlu0 %v2033_v44, %s1944_s30 }
 0x11b   :  { %824 = vrot.lane.b32.xlu1 %v2027_v42, %s1945_s4  ;;  %447 = vrot.lane.b32.xlu0 %v2055_v51, %s1942_s0 }
 0x11f   :  { %840 = vrot.lane.b32.xlu1 %v2033_v44, %s1945_s4  ;;  %463 = vrot.lane.b32.xlu0 %v2061_v53, %s1942_s0 }
 0x123   :  { %572 = vrot.lane.b32.xlu1 %v2055_v51, %s1929_s23  ;;  %818 = vrot.lane.b32.xlu0 %v2055_v51, %s1945_s4 }
 0x127   :  { %588 = vrot.lane.b32.xlu1 %v2061_v53, %s1929_s23  ;;  %834 = vrot.lane.b32.xlu0 %v2061_v53, %s1945_s4 }
 0x12b   :  { %693 = vrot.lane.b32.xlu1 %v2055_v51, %s1943_s2  ;;  %455 = vrot.lane.b32.xlu0 %v2075_v59, %s1942_s0 }
 0x12f   :  { %709 = vrot.lane.b32.xlu1 %v2061_v53, %s1943_s2  ;;  %471 = vrot.lane.b32.xlu0 %v2081_v62, %s1942_s0 }
 0x133   :  { %939 = vrot.lane.b32.xlu1 %v2055_v51, %s1944_s30  ;;  %826 = vrot.lane.b32.xlu0 %v2075_v59, %s1945_s4 }
 0x137   :  { %955 = vrot.lane.b32.xlu1 %v2061_v53, %s1944_s30  ;;  %842 = vrot.lane.b32.xlu0 %v2081_v62, %s1945_s4 }
 0x13b   :  { %580 = vrot.lane.b32.xlu1 %v2075_v59, %s1929_s23  ;;  %574 = vrot.lane.b32.xlu0 %v2099_v7, %s1929_s23 }
 0x13f   :  { %596 = vrot.lane.b32.xlu1 %v2081_v62, %s1929_s23  ;;  %590 = vrot.lane.b32.xlu0 %v2107_v10, %s1929_s23 }
 0x143   :  { %701 = vrot.lane.b32.xlu1 %v2075_v59, %s1943_s2  ;;  %711 = vrot.lane.b32.xlu0 %v2107_v10, %s1943_s2 }
 0x147   :  { %717 = vrot.lane.b32.xlu1 %v2081_v62, %s1943_s2  ;;  %941 = vrot.lane.b32.xlu0 %v2099_v7, %s1944_s30 }
 0x14b   :  { %947 = vrot.lane.b32.xlu1 %v2075_v59, %s1944_s30  ;;  %957 = vrot.lane.b32.xlu0 %v2107_v10, %s1944_s30 }
 0x14f   :  { %449 = vrot.lane.b32.xlu1 %v2099_v7, %s1942_s0  ;;  %582 = vrot.lane.b32.xlu0 %v2137_v24, %s1929_s23 }
 0x153   :  { %465 = vrot.lane.b32.xlu1 %v2107_v10, %s1942_s0  ;;  %598 = vrot.lane.b32.xlu0 %v2145_v27, %s1929_s23 }
 0x157   :  { %695 = vrot.lane.b32.xlu1 %v2099_v7, %s1943_s2  ;;  %703 = vrot.lane.b32.xlu0 %v2137_v24, %s1943_s2 }
 0x15b   :  { %820 = vrot.lane.b32.xlu1 %v2099_v7, %s1945_s4  ;;  %719 = vrot.lane.b32.xlu0 %v2145_v27, %s1943_s2 }
 0x15f   :  { %836 = vrot.lane.b32.xlu1 %v2107_v10, %s1945_s4  ;;  %949 = vrot.lane.b32.xlu0 %v2137_v24, %s1944_s30 }
 0x163   :  { %1062 = vrot.lane.b32.xlu1 %v2099_v7, %s1946_s5  ;;  %965 = vrot.lane.b32.xlu0 %v2145_v27, %s1944_s30 }
 0x167   :  { %1078 = vrot.lane.b32.xlu1 %v2107_v10, %s1946_s5  ;;  %451 = vrot.lane.b32.xlu0 %v2181_v45, %s1942_s0 }
 0x169   :  { %v2187_v47 = vpop.permute.xlu1 %445  ;;  %v2191_v49 = vpop.permute.xlu0 %586 }
 0x16a   :  { %3712 = vst [vmem:[#allocation32_spill] sm:$0xff] %v2187_v47  ;;  %3713 = vst [vmem:[#allocation33_spill] sm:$0xff] %v2191_v49  ;;  %v1728_v47 = vunpack.i.h.bf16 %v2111_v11  ;;  %v3738_v49 = vmov 0 }
 0x16b   :  { %457 = vrot.lane.b32.xlu1 %v2137_v24, %s1942_s0  ;;  %467 = vrot.lane.b32.xlu0 %v2189_v48, %s1942_s0 }
 0x16d   :  { %v2197_v50 = vpop.permute.xlu1 %461  ;;  %v2199_v52 = vpop.permute.xlu0 %707 }
 0x16e   :  { %3714 = vst [vmem:[#allocation34_spill] sm:$0xff] %v2197_v50  ;;  %3715 = vst [vmem:[#allocation35_spill] sm:$0xff] %v2199_v52  ;;  %v321_v50 = vand.u32 255, %v2295_v8  ;;  %v3735_v52 = vmov 0 }
 0x16f   :  { %473 = vrot.lane.b32.xlu1 %v2145_v27, %s1942_s0  ;;  %822 = vrot.lane.b32.xlu0 %v2181_v45, %s1945_s4 }
 0x170   :  { %vm2351_vm4 = vcmp.ge.s32.totalorder %v321_v50, 16  ;;  %v3749_v50 = vmov 0 }
 0x171   :  { %v2205_v54 = vpop.permute.xlu1 %570  ;;  %v2207_v55 = vpop.permute.xlu0 %953 }
 0x172   :  { %3716 = vst [vmem:[#allocation36_spill] sm:$0xff] %v2205_v54  ;;  %3717 = vst [vmem:[#allocation37_spill] sm:$0xff] %v2207_v55 }
 0x173   :  { %828 = vrot.lane.b32.xlu1 %v2137_v24, %s1945_s4  ;;  %838 = vrot.lane.b32.xlu0 %v2189_v48, %s1945_s4 }
 0x175   :  { %v2213_v57 = vpop.permute.xlu1 %691  ;;  %v2215_v60 = vpop.permute.xlu0 %578 }
 0x176   :  { %3718 = vst [vmem:[#allocation38_spill] sm:$0xff] %v2213_v57  ;;  %3719 = vst [vmem:[#allocation39_spill] sm:$0xff] %v2215_v60  ;;  %v2323_v57 = vunpack.i.h.bf16 %v2155_v29  ;;  %v2345_v60 = vunpack.i.h.bf16 %v2159_v30  ;;  %v3741_v29 = vmov 0 }
 0x177   :  { %844 = vrot.lane.b32.xlu1 %v2145_v27, %s1945_s4  ;;  %1064 = vrot.lane.b32.xlu0 %v2181_v45, %s1946_s5  ;;  %v3742_v29 = vsel %vm2351_vm4, 4294967295, %v3741_v29 }
 0x178   :  { %3743 = vst [vmem:[#allocation57_spill] sm:$0xff] %v3742_v29  ;;  %v3798_v29 = vmov 0 }
 0x179   :  { %v2221_v63 = vpop.permute.xlu1 %816  ;;  %v2223_v3 = vpop.permute.xlu0 %594 }
 0x17a   :  { %3720 = vst [vmem:[#allocation40_spill] sm:$0xff] %v2221_v63  ;;  %3721 = vst [vmem:[#allocation41_spill] sm:$0xff] %v2223_v3  ;;  %v267_v63 = vadd.s32 256, %v2295_v8  ;;  %v273_v3 = vand.u32 15, %v2295_v8 }
 0x17b   :  { %1070 = vrot.lane.b32.xlu1 %v2137_v24, %s1946_s5  ;;  %1080 = vrot.lane.b32.xlu0 %v2189_v48, %s1946_s5 }
 0x17c   :  { %vm2355_vm5 = vcmp.ne.s32.totalorder %v273_v3, 0  ;;  %vm2422_vm14 = vcmp.ne.s32.totalorder %v273_v3, 15 }
 0x17d   :  { %v2229_v5 = vpop.permute.xlu1 %832  ;;  %v2233_v13 = vpop.permute.xlu0 %699  ;;  %vm2400_vm12 = vmand %vm2351_vm4, %vm2355_vm5 }
 0x17e   :  { %3722 = vst [vmem:[#allocation42_spill] sm:$0xff] %v2229_v5  ;;  %3723 = vst [vmem:[#allocation43_spill] sm:$0xff] %v2233_v13  ;;  %v2307_v5 = vadd.s32 128, %v2295_v8  ;;  %v2326_v13 = vadd.s32 384, %v2295_v8 }
 0x17f   :  { %1086 = vrot.lane.b32.xlu1 %v2145_v27, %s1946_s5  ;;  %459 = vrot.lane.b32.xlu0 %v2231_v6, %s1942_s0 }
 0x180   :  { %3732 = vst [vmem:[#allocation52_spill] sm:$0xff] %v2307_v5  ;;  %3734 = vst [vmem:[#allocation54_spill] sm:$0xff] %v2326_v13 }
 0x181   :  { %v2239_v15 = vpop.permute.xlu1 %937  ;;  %v2243_v20 = vpop.permute.xlu0 %715 }
 0x182   :  { %3724 = vst [vmem:[#allocation44_spill] sm:$0xff] %v2239_v15  ;;  %3725 = vst [vmem:[#allocation45_spill] sm:$0xff] %v2243_v20  ;;  %v2315_v15 = vunpack.i.h.bf16 %v2115_v12 }
 0x183   :  { %576 = vrot.lane.b32.xlu1 %v2181_v45, %s1929_s23  ;;  %475 = vrot.lane.b32.xlu0 %v2241_v19, %s1942_s0 }
 0x185   :  { %v2249_v21 = vpop.permute.xlu1 %453  ;;  %v2251_v25 = vpop.permute.xlu0 %945 }
 0x186   :  { %3726 = vst [vmem:[#allocation46_spill] sm:$0xff] %v2249_v21  ;;  %3727 = vst [vmem:[#allocation47_spill] sm:$0xff] %v2251_v25  ;;  %v287_v25 = vand.u32 15, %v267_v63  ;;  %v2320_v21 = vunpack.i.h.bf16 %v2135_v23  ;;  %v3744_v23 = vmov 0 }
 0x187   :  { %592 = vrot.lane.b32.xlu1 %v2189_v48, %s1929_s23  ;;  %830 = vrot.lane.b32.xlu0 %v2231_v6, %s1945_s4  ;;  %v3745_v23 = vsel %vm2355_vm5, 4294967295, %v3744_v23 }
 0x188   :  { %vm2330_vm1 = vcmp.ne.s32.totalorder %v287_v25, 0  ;;  %3746 = vst [vmem:[#allocation58_spill] sm:$0xff] %v3745_v23  ;;  %vm2386_vm8 = vcmp.ne.s32.totalorder %v287_v25, 15 }
 0x189   :  { %v2257_v31 = vpop.permute.xlu1 %469  ;;  %v2259_v32 = vpop.permute.xlu0 %961  ;;  %v3736_v52 = vsel %vm2330_vm1, 4294967295, %v3735_v52 }
 0x18a   :  { %3728 = vst [vmem:[#allocation48_spill] sm:$0xff] %v2257_v31  ;;  %3729 = vst [vmem:[#allocation49_spill] sm:$0xff] %v2259_v32  ;;  %v335_v31 = vand.u32 255, %v267_v63  ;;  %v280_v63 = vand.u32 15, %v2307_v5 }
 0x18b   :  { %697 = vrot.lane.b32.xlu1 %v2181_v45, %s1943_s2  ;;  %846 = vrot.lane.b32.xlu0 %v2241_v19, %s1945_s4 }
 0x18c   :  { %vm2347_vm3 = vcmp.ge.s32.totalorder %v335_v31, 16  ;;  %vm2362_vm6 = vcmp.ne.s32.totalorder %v280_v63, 0  ;;  %vm2405_vm13 = vcmp.ne.s32.totalorder %v280_v63, 15  ;;  %v404_v63 = vmul.f32 %v1705_v61, %v2081_v62 }
 0x18d   :  { %v2265_v34 = vpop.permute.xlu1 %824  ;;  %v448_v38 = vpop.permute.xlu0 %447  ;;  %v3739_v49 = vsel %vm2347_vm3, 4294967295, %v3738_v49  ;;  %vm2370_vm7 = vmand %vm2347_vm3, %vm2330_vm1 }
 0x18e   :  { %3730 = vst [vmem:[#allocation50_spill] sm:$0xff] %v2265_v34  ;;  %3740 = vst [vmem:[#allocation56_spill] sm:$0xff] %v3739_v49  ;;  %v3750_v50 = vsel %vm2370_vm7, 4294967295, %v3749_v50 }
 0x18f   :  { %713 = vrot.lane.b32.xlu1 %v2189_v48, %s1943_s2  ;;  %1187 = vrot.lane.b32.xlu0 %v2099_v7, %s1947_s6  ;;  %3751 = vst [vmem:[#allocation59_spill] sm:$0xff] %v3750_v50 }
 0x191   :  { %v2271_v39 = vpop.permute.xlu1 %840  ;;  %v464_v40 = vpop.permute.xlu0 %463 }
 0x192   :  { %3731 = vst [vmem:[#allocation51_spill] sm:$0xff] %v2271_v39 }
 0x193   :  { %943 = vrot.lane.b32.xlu1 %v2181_v45, %s1944_s30  ;;  %1072 = vrot.lane.b32.xlu0 %v2231_v6, %s1946_s5 }
 0x195   :  { %v2277_v46 = vpop.permute.xlu1 %572  ;;  %v2279_v56 = vpop.permute.xlu0 %818 }
 0x197   :  { %959 = vrot.lane.b32.xlu1 %v2189_v48, %s1944_s30  ;;  %1088 = vrot.lane.b32.xlu0 %v2241_v19, %s1946_s5 }
 0x199   :  { %v2285_v58 = vpop.permute.xlu1 %588  ;;  %v2287_v0 = vpop.permute.xlu0 %834 }
 0x19b   :  { %584 = vrot.lane.b32.xlu1 %v2231_v6, %s1929_s23  ;;  %1195 = vrot.lane.b32.xlu0 %v2137_v24, %s1947_s6 }
 0x19d   :  { %v2293_v2 = vpop.permute.xlu1 %693  ;;  %v456_v39 = vpop.permute.xlu0 %455 }
 0x19e   :  { %v483_v54 = vsel %vm3623_vm2, %v456_v39, %v464_v40  ;;  %v487_v41 = vsel %vm3623_vm2, %v448_v38, %v456_v39  ;;  %v294_v39 = vand.u32 15, %v2326_v13 }
 0x19f   :  { %600 = vrot.lane.b32.xlu1 %v2241_v19, %s1929_s23  ;;  %1203 = vrot.lane.b32.xlu0 %v2107_v10, %s1947_s6  ;;  %v511_v13 = vsel %vm2362_vm6, %v487_v41, 0.0  ;;  %v512_v5 = vsel %vm2370_vm7, %v483_v54, 0.0  ;;  %v3756_v41 = vmov 0  ;;  %v3759_v54 = vmov 0 }
 0x1a0   :  { %vm2392_vm11 = vcmp.ne.s32.totalorder %v294_v39, 0  ;;  %v3757_v41 = vsel %vm2400_vm12, 4294967295, %v3756_v41  ;;  %v3760_v54 = vsel %vm2405_vm13, 4294967295, %v3759_v54  ;;  %v543_v16 = vmul.f32 %v1728_v47, %v511_v13 }
 0x1a1   :  { %v2301_v32 = vpop.permute.xlu1 %709  ;;  %v472_v34 = vpop.permute.xlu0 %471  ;;  %3758 = vst [vmem:[#allocation60_spill] sm:$0xff] %v3757_v41  ;;  %3761 = vst [vmem:[#allocation61_spill] sm:$0xff] %v3760_v54  ;;  %v544_v22 = vmul.f32 %v1728_v47, %v512_v5  ;;  %v435_v41 = vadd.f32 %v2315_v15, %v403_v37  ;;  %vm2436_vm0 = vcmp.ne.s32.totalorder %v294_v39, 15 }
 0x1a2   :  { %v479_v31 = vsel %vm3623_vm2, %v464_v40, %v472_v34  ;;  %v491_v30 = vsel %vm3623_vm2, %v472_v34, %v448_v38  ;;  %v3752_v40 = vmov 0  ;;  %vm2472_vm2 = vmand %vm2347_vm3, %vm2386_vm8 }
 0x1a3   :  { %705 = vrot.lane.b32.xlu1 %v2231_v6, %s1943_s2  ;;  %1211 = vrot.lane.b32.xlu0 %v2145_v27, %s1947_s6  ;;  %v3753_v40 = vsel %vm2386_vm8, 4294967295, %v3752_v40  ;;  %v510_v25 = vsel %vm2400_vm12, %v491_v30, 0.0  ;;  %v513_v38 = vsel %vm2392_vm11, %v479_v31, 0.0  ;;  %v3762_v30 = vmov 0 }
 0x1a4   :  { %v3763_v30 = vsel %vm2422_vm14, 4294967295, %v3762_v30  ;;  %v434_v31 = vadd.f32 %v2315_v15, %v402_v1  ;;  %v542_v14 = vmul.f32 %v1728_v47, %v510_v25  ;;  %v545_v13 = vmul.f32 %v1728_v47, %v513_v38 }
 0x1a5   :  { %v2312_v55 = vpop.permute.xlu1 %939  ;;  %v827_v20 = vpop.permute.xlu0 %826  ;;  %v560_v25 = vadd.f32 %v544_v22, %v435_v41  ;;  %v436_v38 = vadd.f32 %v2315_v15, %v404_v63 }
 0x1a6   :  { %3733 = vst [vmem:[#allocation53_spill] sm:$0xff] %v2312_v55  ;;  %v854_v1 = vsel %vm3624_vm15, %v827_v20, %v2287_v0  ;;  %v858_v37 = vsel %vm3624_vm15, %v2279_v56, %v827_v20 }
 0x1a7   :  { %721 = vrot.lane.b32.xlu1 %v2241_v19, %s1943_s2  ;;  %1803 = vperm.xlu0 %1801, %v1984_v17   ;;  %v561_v22 = vadd.f32 %v545_v13, %v436_v38  ;;  %v878_v41 = vsel %vm2362_vm6, %v858_v37, 0.0 }
 0x1a9   :  { %v2342_v33 = vpop.permute.xlu1 %955  ;;  %v2359_v11 = vpop.permute.xlu0 %842 }
 0x1aa   :  { %3737 = vst [vmem:[#allocation55_spill] sm:$0xff] %v2342_v33  ;;  %v862_v63 = vsel %vm3624_vm15, %v2359_v11, %v2279_v56 }
 0x1ab   :  { %951 = vrot.lane.b32.xlu1 %v2231_v6, %s1944_s30  ;;  %1807 = vset.pattern.permute.xlu0 %v1948_v28 }
 0x1ac   :  { %1809 = vperm.xlu0 %1807, %v1988_v18   ;;  %v401_v18 = vmul.f32 %v1705_v61, %v2055_v51 }
 0x1ad   :  { %v581_v28 = vpop.permute.xlu1 %580  ;;  %v2413_v50 = vpop.permute.xlu0 %574 }
 0x1ae   :  { %v608_v26 = vsel %vm3629_vm9, %v581_v28, %v2285_v58  ;;  %v612_v5 = vsel %vm3629_vm9, %v2277_v46, %v581_v28  ;;  %v559_v28 = vadd.f32 %v543_v16, %v434_v31  ;;  %v433_v39 = vadd.f32 %v2315_v15, %v401_v18 }
 0x1af   :  { %967 = vrot.lane.b32.xlu1 %v2241_v19, %s1944_s30  ;;  %v633_v61 = vsel %vm2347_vm3, %v608_v26, 0.0  ;;  %v664_v4 = vmul.f32 %v2320_v21, %v612_v5  ;;  %v879_v15 = vsel %vm2330_vm1, %v854_v1, 0.0 }
 0x1b0   :  { %1066 = vrot.lane.b32.xlu0 %v2027_v42, %s1946_s5  ;;  %v665_v53 = vmul.f32 %v2320_v21, %v633_v61  ;;  %v558_v16 = vadd.f32 %v542_v14, %v433_v39  ;;  %v850_v14 = vsel %vm3624_vm15, %v2287_v0, %v2359_v11  ;;  %v910_v39 = vmul.f32 %v2323_v57, %v878_v41  ;;  %vm2514_vm15 = vmand %vm2351_vm4, %vm2422_vm14 }
 0x1b1   :  { %v597_v3 = vpop.permute.xlu1 %596  ;;  %v2446_v47 = vpop.permute.xlu0 %590  ;;  %v680_v56 = vadd.f32 %v664_v4, %v559_v28  ;;  %v911_v38 = vmul.f32 %v2323_v57, %v879_v15 }
 0x1b2   :  { %v616_v26 = vsel %vm3629_vm9, %v597_v3, %v2277_v46  ;;  %v604_v20 = vsel %vm3629_vm9, %v2285_v58, %v597_v3  ;;  %v3766_v58 = vmov 0  ;;  %v681_v1 = vadd.f32 %v665_v53, %v560_v25 }
 0x1b3   :  { %963 = vrot.lane.b32.xlu1 %v2081_v62, %s1944_s30  ;;  %v631_v46 = vsel %vm2351_vm4, %v616_v26, 0.0  ;;  %v3767_v58 = vsel %vm2472_vm2, 4294967295, %v3766_v58  ;;  %v666_v3 = vmul.f32 %v2320_v21, %v604_v20  ;;  %v880_v20 = vsel %vm2392_vm11, %v850_v14, 0.0 }
 0x1b4   :  { %1074 = vrot.lane.b32.xlu0 %v2013_v36, %s1946_s5  ;;  %3768 = vst [vmem:[#allocation62_spill] sm:$0xff] %v3767_v58  ;;  %v663_v61 = vmul.f32 %v2320_v21, %v631_v46  ;;  %v877_v21 = vsel %vm2355_vm5, %v862_v63, 0.0  ;;  %v3769_v53 = vmov 0 }
 0x1b5   :  { %v702_v18 = vpop.permute.xlu1 %701  ;;  %v2484_v31 = vpop.permute.xlu0 %711  ;;  %v3770_v53 = vsel %vm2514_vm15, 4294967295, %v3769_v53  ;;  %v682_v14 = vadd.f32 %v666_v3, %v561_v22  ;;  %v912_v22 = vmul.f32 %v2323_v57, %v880_v20 }
 0x1b6   :  { %v729_v13 = vsel %vm3625_vm10, %v702_v18, %v2301_v32  ;;  %v733_v5 = vsel %vm3625_vm10, %v2293_v2, %v702_v18  ;;  %3771 = vst [vmem:[#allocation63_spill] sm:$0xff] %v3770_v53  ;;  %v679_v18 = vadd.f32 %v663_v61, %v558_v16  ;;  %v909_v16 = vmul.f32 %v2323_v57, %v877_v21 }
 0x1b7   :  { %v757_v0 = vsel %vm2405_vm13, %v733_v5, 0.0  ;;  %v758_v11 = vsel %vm2472_vm2, %v729_v13, 0.0  ;;  %1189 = vrot.lane.b32.xlu1 %v2181_v45, %s1947_s6 }
 0x1b8   :  { %v789_v37 = vmul.f32 %v2345_v60, %v757_v0  ;;  %v790_v26 = vmul.f32 %v2345_v60, %v758_v11  ;;  %1082 = vrot.lane.b32.xlu0 %v2033_v44, %s1946_s5 }
 0x1b9   :  { %v718_v46 = vpop.permute.xlu1 %717  ;;  %v2518_v25 = vpop.permute.xlu0 %941 }
 0x1ba   :  { %v805_v4 = vadd.f32 %v789_v37, %v680_v56  ;;  %v806_v28 = vadd.f32 %v790_v26, %v681_v1  ;;  %v725_v41 = vsel %vm3625_vm10, %v2301_v32, %v718_v46  ;;  %v737_v15 = vsel %vm3625_vm10, %v718_v46, %v2293_v2 }
 0x1bb   :  { %v756_v63 = vsel %vm2514_vm15, %v737_v15, 0.0  ;;  %v759_v13 = vsel %vm2436_vm0, %v725_v41, 0.0  ;;  %1197 = vrot.lane.b32.xlu1 %v2231_v6, %s1947_s6  ;;  %v2537_v2 = vunpack.i.h.bf16 %v2179_v43  ;;  %vm3626_vm10 = vcmp.lt.s32.totalorder %v2295_v8, 127  ;;  %v3789_v43 = vld [vmem:[#allocation21_spill] sm:$0xff] }
 0x1bc   :  { %v788_v5 = vmul.f32 %v2345_v60, %v756_v63  ;;  %v791_v0 = vmul.f32 %v2345_v60, %v759_v13  ;;  %v926_v32 = vadd.f32 %v910_v39, %v805_v4  ;;  %v2534_v11 = vadd.f32 %v911_v38, %v806_v28  ;;  %1308 = vrot.lane.b32.xlu0 %v2099_v7, %s1949_s7 }
 0x1bd   :  { %3773 = vst [vmem:[#allocation65_spill] sm:$0xff] %v2537_v2  ;;  %v948_v61 = vpop.permute.xlu1 %947  ;;  %v958_v60 = vpop.permute.xlu0 %957 }
 0x1be   :  { %3772 = vst [vmem:[#allocation64_spill] sm:$0xff] %v2534_v11  ;;  %v804_v3 = vadd.f32 %v788_v5, %v679_v18  ;;  %v807_v56 = vadd.f32 %v791_v0, %v682_v14  ;;  %v975_v1 = vsel %vm3626_vm10, %v948_v61, %v2342_v33  ;;  %v979_v37 = vsel %vm3626_vm10, %v2312_v55, %v948_v61  ;;  %v3792_v33 = vld [vmem:[#allocation24_spill] sm:$0xff] }
 0x1bf   :  { %v998_v26 = vsel %vm2422_vm14, %v979_v37, 0.0  ;;  %v999_v57 = vsel %vm2405_vm13, %v975_v1, 0.0  ;;  %1205 = vrot.lane.b32.xlu1 %v2189_v48, %s1947_s6  ;;  %vm3777_vm10 = vcmp.lt.s32.totalorder %v2295_v8, 15  ;;  %v3783_v37 = vld [vmem:[#allocation13_spill] sm:$0xff] }
 0x1c0   :  { %v925_v39 = vadd.f32 %v909_v16, %v804_v3  ;;  %v1030_v38 = vmul.f32 %v2537_v2, %v998_v26  ;;  %v1031_v21 = vmul.f32 %v2537_v2, %v999_v57  ;;  %v2558_v20 = vadd.f32 %v912_v22, %v807_v56  ;;  %1316 = vrot.lane.b32.xlu0 %v2137_v24, %s1949_s7  ;;  %vm3778_vm5 = vmmov %vm3777_vm10  ;;  %v3784_v26 = vld [vmem:[#allocation15_spill] sm:$0xff] }
 0x1c1   :  { %v2562_v46 = vpop.permute.xlu1 %449  ;;  %v583_v41 = vpop.permute.xlu0 %582  ;;  %vm3780_vm1 = vmmov %vm3778_vm5  ;;  %v1709_v57 = vunpack.i.l.bf16 %v3784_v26  ;;  %v3791_v2 = vld [vmem:[#allocation23_spill] sm:$0xff] }
 0x1c2   :  { %3774 = vst [vmem:[#allocation66_spill] sm:$0xff] %v2558_v20  ;;  %v2564_v4 = vadd.f32 %v1030_v38, %v925_v39  ;;  %v2566_v28 = vadd.f32 %v1031_v21, %v926_v32  ;;  %v2571_v15 = vsel %vm3629_vm9, %v583_v41, %v2446_v47  ;;  %v613_v18 = vsel %vm3629_vm9, %v2413_v50, %v583_v41 }
 0x1c3   :  { %1213 = vrot.lane.b32.xlu1 %v2241_v19, %s1947_s6  ;;  %v1751_v20 = vunpack.i.l.bf16 %v3789_v43  ;;  %v2667_v55 = vunpack.i.l.bf16 %v3791_v2 }
 0x1c4   :  { %3775 = vst [vmem:[#allocation67_spill] sm:$0xff] %v2564_v4  ;;  %3776 = vst [vmem:[#allocation68_spill] sm:$0xff] %v2566_v28  ;;  %1324 = vrot.lane.b32.xlu0 %v2107_v10, %s1949_s7  ;;  %v408_v28 = vmul.f32 %v1709_v57, %v2145_v27 }
 0x1c5   :  { %v2580_v14 = vpop.permute.xlu1 %465  ;;  %v599_v63 = vpop.permute.xlu0 %598 }
 0x1c6   :  { %v2585_v13 = vsel %vm3629_vm9, %v2446_v47, %v599_v63  ;;  %v2590_v5 = vsel %vm3629_vm9, %v599_v63, %v2413_v50  ;;  %vm3779_vm9 = vmmov %vm3778_vm5  ;;  %v406_v63 = vmul.f32 %v1709_v57, %v2137_v24  ;;  %v3790_v24 = vld [vmem:[#allocation20_spill] sm:$0xff] }
 0x1c7   :  { %1058 = vrot.lane.b32.xlu1 %v2011_v35, %s1946_s5  ;;  %v1733_v11 = vunpack.i.l.bf16 %v3790_v24  ;;  %v3793_v24 = vld [vmem:[#allocation52_spill] sm:$0xff] }
 0x1c8   :  { %1332 = vrot.lane.b32.xlu0 %v2145_v27, %s1949_s7 }
 0x1c9   :  { %v696_v0 = vpop.permute.xlu1 %695  ;;  %v704_v32 = vpop.permute.xlu0 %703 }
 0x1ca   :  { %v730_v16 = vsel %vm3777_vm10, %v704_v32, %v2484_v31  ;;  %v2601_v47 = vsel %vm3778_vm5, %v696_v0, %v704_v32  ;;  %vm3781_vm5 = vcmp.lt.s32.totalorder %v2295_v8, 127 }
 0x1cb   :  { %1060 = vrot.lane.b32.xlu1 %v2055_v51, %s1946_s5  ;;  %v762_v2 = vsel %vm2472_vm2, %v730_v16, 0.0 }
 0x1cc   :  { %1814 = vperm.xlu0 %1807, %v1984_v17   ;;  %v794_v58 = vmul.f32 %v1751_v20, %v762_v2 }
 0x1cd   :  { %v2606_v50 = vpop.permute.xlu1 %820  ;;  %v720_v22 = vpop.permute.xlu0 %719 }
 0x1ce   :  { %v2611_v61 = vsel %vm3779_vm9, %v2484_v31, %v720_v22  ;;  %v2615_v3 = vsel %vm3780_vm1, %v720_v22, %v696_v0  ;;  %vm3782_vm9 = vmmov %vm3781_vm5  ;;  %v3787_v0 = vld [vmem:[#allocation16_spill] sm:$0xff] }
 0x1cf   :  { %1068 = vrot.lane.b32.xlu1 %v2075_v59, %s1946_s5  ;;  %vm3785_vm1 = vmmov %vm3781_vm5  ;;  %v1721_v32 = vunpack.i.l.bf16 %v3787_v0 }
 0x1d0   :  { %1191 = vrot.lane.b32.xlu0 %v2027_v42, %s1947_s6  ;;  %vm3786_vm10 = vmmov %vm3785_vm1 }
 0x1d1   :  { %v2621_v56 = vpop.permute.xlu1 %836  ;;  %v950_v17 = vpop.permute.xlu0 %949  ;;  %v438_v27 = vadd.f32 %v1721_v32, %v406_v63  ;;  %v440_v0 = vadd.f32 %v1721_v32, %v408_v28  ;;  %v3796_v63 = vld [vmem:[#allocation54_spill] sm:$0xff] }
 0x1d2   :  { %v2625_v1 = vsel %vm3781_vm5, %v950_v17, %v958_v60  ;;  %v2630_v31 = vsel %vm3782_vm9, %v2518_v25, %v950_v17  ;;  %v405_v17 = vmul.f32 %v1709_v57, %v2099_v7  ;;  %v637_v7 = vsel %vm2347_vm3, %v2571_v15, 0.0 }
 0x1d3   :  { %1076 = vrot.lane.b32.xlu1 %v3783_v37, %s1946_s5  ;;  %vm3794_vm5 = vcmp.lt.s32.totalorder %v2295_v8, 17 }
 0x1d4   :  { %1199 = vrot.lane.b32.xlu0 %v2013_v36, %s1947_s6  ;;  %vm3795_vm9 = vmmov %vm3794_vm5 }
 0x1d5   :  { %v2637_v39 = vpop.permute.xlu1 %1062  ;;  %v966_v38 = vpop.permute.xlu0 %965 }
 0x1d6   :  { %v2641_v21 = vsel %vm3785_vm1, %v958_v60, %v966_v38  ;;  %v2646_v41 = vsel %vm3786_vm10, %v966_v38, %v2518_v25  ;;  %v407_v60 = vmul.f32 %v1709_v57, %v2107_v10  ;;  %v3788_v38 = vld [vmem:[#allocation19_spill] sm:$0xff]  ;;  %v2670_v10 = vunpack.i.l.bf16 %v3792_v33  ;;  %vm3802_vm10 = vmmov %vm3794_vm5 }
 0x1d7   :  { %1084 = vrot.lane.b32.xlu1 %v2081_v62, %s1946_s5  ;;  %v1745_v4 = vunpack.i.l.bf16 %v3788_v38  ;;  %v437_v38 = vadd.f32 %v1721_v32, %v405_v17 }
 0x1d8   :  { %1207 = vrot.lane.b32.xlu0 %v2033_v44, %s1947_s6  ;;  %v439_v57 = vadd.f32 %v1721_v32, %v407_v60 }
 0x1d9   :  { %v2654_v22 = vpop.permute.xlu1 %1078  ;;  %v2659_v25 = vpop.permute.xlu0 %451  ;;  %v668_v49 = vmul.f32 %v1745_v4, %v613_v18  ;;  %v669_v17 = vmul.f32 %v1745_v4, %v637_v7  ;;  %v670_v7 = vmul.f32 %v1745_v4, %v2585_v13 }
 0x1db   :  { %1310 = vrot.lane.b32.xlu1 %v2181_v45, %s1949_s7  ;;  %v328_v45 = vand.u32 255, %v3793_v24  ;;  %v635_v24 = vsel %vm2351_vm4, %v2590_v5, 0.0 }
 0x1dc   :  { %1304 = vrot.lane.b32.xlu0 %v2011_v35, %s1949_s7 }
 0x1dd   :  { %v458_v43 = vpop.permute.xlu1 %457  ;;  %v2680_v26 = vpop.permute.xlu0 %467  ;;  %vm2710_vm1 = vcmp.lt.s32.totalorder %v328_v45, 240  ;;  %v1003_v45 = vsel %vm2405_vm13, %v2625_v1, 0.0  ;;  %v1004_v1 = vsel %vm2386_vm8, %v2641_v21, 0.0  ;;  %vm3808_vm8 = vnez %v3745_v23 }
 0x1de   :  { %v484_v33 = vsel %vm3794_vm5, %v458_v43, %v2580_v14  ;;  %v488_v15 = vsel %vm3795_vm9, %v2562_v46, %v458_v43  ;;  %v761_v43 = vsel %vm2405_vm13, %v2601_v47, 0.0  ;;  %v3799_v29 = vsel %vm2710_vm1, 4294967295, %v3798_v29 }
 0x1df   :  { %v515_v28 = vsel %vm2362_vm6, %v488_v15, 0.0  ;;  %v516_v16 = vsel %vm2370_vm7, %v484_v33, 0.0  ;;  %1318 = vrot.lane.b32.xlu1 %v2231_v6, %s1949_s7  ;;  %v760_v33 = vsel %vm2514_vm15, %v2615_v3, 0.0  ;;  %v763_v15 = vsel %vm2436_vm0, %v2611_v61, 0.0  ;;  %3800 = vst [vmem:[#allocation13_spill] sm:$0xff] %v3799_v29 }
 0x1e0   :  { %v547_v60 = vmul.f32 %v1733_v11, %v515_v28  ;;  %v548_v18 = vmul.f32 %v1733_v11, %v516_v16  ;;  %1312 = vrot.lane.b32.xlu0 %v2027_v42, %s1949_s7  ;;  %v793_v3 = vmul.f32 %v1751_v20, %v761_v43  ;;  %v3803_v16 = vld [vmem:[#allocation60_spill] sm:$0xff]  ;;  %v667_v43 = vmul.f32 %v1745_v4, %v635_v24 }
 0x1e1   :  { %v474_v5 = vpop.permute.xlu1 %473  ;;  %v2714_v13 = vpop.permute.xlu0 %822  ;;  %vm3806_vm9 = vnez %v3736_v52  ;;  %v3979_v52 = vld [vmem:[#allocation68_spill] sm:$0xff] }
 0x1e2   :  { %v563_v47 = vadd.f32 %v547_v60, %v438_v27  ;;  %v564_v28 = vadd.f32 %v548_v18, %v439_v57  ;;  %3801 = vst [vmem:[#allocation52_spill] sm:$0xff] %v2714_v13  ;;  %v480_v2 = vsel %vm3802_vm10, %v2580_v14, %v474_v5  ;;  %v492_v61 = vsel %vm3794_vm5, %v474_v5, %v2562_v46 }
 0x1e3   :  { %v514_v42 = vsel %vm2400_vm12, %v492_v61, 0.0  ;;  %v517_v27 = vsel %vm2392_vm11, %v480_v2, 0.0  ;;  %1326 = vrot.lane.b32.xlu1 %v2189_v48, %s1949_s7  ;;  %v792_v18 = vmul.f32 %v1751_v20, %v760_v33  ;;  %v795_v5 = vmul.f32 %v1751_v20, %v763_v15 }
 0x1e4   :  { %v684_v14 = vadd.f32 %v668_v49, %v563_v47  ;;  %v685_v57 = vadd.f32 %v669_v17, %v564_v28  ;;  %v546_v60 = vmul.f32 %v1733_v11, %v514_v42  ;;  %v549_v46 = vmul.f32 %v1733_v11, %v517_v27  ;;  %1320 = vrot.lane.b32.xlu0 %v2013_v36, %s1949_s7 }
 0x1e5   :  { %v829_v2 = vpop.permute.xlu1 %828  ;;  %v2737_v54 = vpop.permute.xlu0 %838  ;;  %v1002_v42 = vsel %vm2422_vm14, %v2630_v31, 0.0  ;;  %v1035_v11 = vmul.f32 %v2667_v55, %v1003_v45  ;;  %vm3804_vm10 = vcmp.lt.s32.totalorder %v2295_v8, 1  ;;  %v1036_v17 = vmul.f32 %v2667_v55, %v1004_v1 }
 0x1e6   :  { %v562_v61 = vadd.f32 %v546_v60, %v437_v38  ;;  %v565_v53 = vadd.f32 %v549_v46, %v440_v0  ;;  %v809_v13 = vadd.f32 %v793_v3, %v684_v14  ;;  %v810_v49 = vadd.f32 %v794_v58, %v685_v57  ;;  %vm3805_vm5 = vmmov %vm3804_vm10  ;;  %v3809_v57 = vld [vmem:[#allocation28_spill] sm:$0xff] }
 0x1e7   :  { %v855_v20 = vsel %vm3804_vm10, %v829_v2, %v2621_v56  ;;  %v859_v4 = vsel %vm3805_vm5, %v2606_v50, %v829_v2  ;;  %1334 = vrot.lane.b32.xlu1 %v2241_v19, %s1949_s7  ;;  %v1005_v38 = vsel %vm2436_vm0, %v2646_v41, 0.0  ;;  %vm3807_vm10 = vmmov %vm3805_vm5  ;;  %v1781_v60 = vunpack.i.l.bf16 %v3809_v57 }
 0x1e8   :  { %v683_v21 = vadd.f32 %v667_v43, %v562_v61  ;;  %v686_v0 = vadd.f32 %v670_v7, %v565_v53  ;;  %v882_v58 = vsel %vm2362_vm6, %v859_v4, 0.0  ;;  %v883_v31 = vsel %vm3806_vm9, %v855_v20, 0.0  ;;  %1328 = vrot.lane.b32.xlu0 %v2033_v44, %s1949_s7 }
 0x1e9   :  { %v914_v24 = vmul.f32 %v2670_v10, %v882_v58  ;;  %v915_v33 = vmul.f32 %v2670_v10, %v883_v31  ;;  %v845_v53 = vpop.permute.xlu1 %844  ;;  %v2763_v7 = vpop.permute.xlu0 %1064  ;;  %v3814_v43 = vmov 0  ;;  %v3819_v31 = vmov 0 }
 0x1ea   :  { %v808_v15 = vadd.f32 %v792_v18, %v683_v21  ;;  %v811_v47 = vadd.f32 %v795_v5, %v686_v0  ;;  %v851_v28 = vsel %vm3807_vm10, %v2621_v56, %v845_v53  ;;  %v863_v41 = vsel %vm3805_vm5, %v845_v53, %v2606_v50  ;;  %vm2784_vm10 = vmand %vm2710_vm1, %vm2362_vm6 }
 0x1eb   :  { %v930_v3 = vadd.f32 %v914_v24, %v809_v13  ;;  %v931_v45 = vadd.f32 %v915_v33, %v810_v49  ;;  %v881_v27 = vsel %vm3808_vm8, %v863_v41, 0.0  ;;  %v884_v14 = vsel %vm2392_vm11, %v851_v28, 0.0  ;;  %1183 = vrot.lane.b32.xlu1 %v2011_v35, %s1947_s6 }
 0x1ec   :  { %v913_v46 = vmul.f32 %v2670_v10, %v881_v27  ;;  %v916_v56 = vmul.f32 %v2670_v10, %v884_v14  ;;  %v3810_v50 = vmov 0  ;;  %v3813_v13 = vand.u32 255, %v3796_v63 }
 0x1ed   :  { %v3811_v50 = vsel %vm2784_vm10, 4294967295, %v3810_v50  ;;  %v1034_v18 = vmul.f32 %v2667_v55, %v1002_v42  ;;  %v1037_v5 = vmul.f32 %v2667_v55, %v1005_v38  ;;  %v1051_v1 = vadd.f32 %v1035_v11, %v930_v3  ;;  %v1071_v10 = vpop.permute.xlu1 %1070  ;;  %v2796_v20 = vpop.permute.xlu0 %1080 }
 0x1ee   :  { %3812 = vst [vmem:[#allocation54_spill] sm:$0xff] %v3811_v50  ;;  %vm2790_vm5 = vcmp.lt.s32.totalorder %v3813_v13, 240  ;;  %v1052_v2 = vadd.f32 %v1036_v17, %v931_v45  ;;  %v929_v61 = vadd.f32 %v913_v46, %v808_v15  ;;  %v932_v49 = vadd.f32 %v916_v56, %v811_v47 }
 0x1ef   :  { %v3815_v43 = vsel %vm2790_vm5, 4294967295, %v3814_v43  ;;  %vm3817_vm1 = vcmp.lt.s32.totalorder %v2295_v8, 113  ;;  %1185 = vrot.lane.b32.xlu1 %v2055_v51, %s1947_s6 }
 0x1f0   :  { %3816 = vst [vmem:[#allocation59_spill] sm:$0xff] %v3815_v43  ;;  %v1097_v4 = vsel %vm3817_vm1, %v1071_v10, %v2654_v22  ;;  %vm3818_vm14 = vmmov %vm3817_vm1  ;;  %v1050_v11 = vadd.f32 %v1034_v18, %v929_v61  ;;  %v1053_v58 = vadd.f32 %v1037_v5, %v932_v49 }
 0x1f1   :  { %v1101_v63 = vsel %vm3818_vm14, %v2637_v39, %v1071_v10  ;;  %v1128_v55 = vsel %vm2784_vm10, %v1097_v4, 0.0  ;;  %vm2814_vm1 = vmand %vm2790_vm5, %vm2392_vm11  ;;  %v1087_v38 = vpop.permute.xlu1 %1086  ;;  %v460_v33 = vpop.permute.xlu0 %459  ;;  %vm3836_vm5 = vcmp.lt.s32.totalorder %v2295_v8, 1 }
 0x1f2   :  { %v1127_v42 = vsel %vm3808_vm8, %v1101_v63, 0.0  ;;  %v1160_v0 = vmul.f32 %v1781_v60, %v1128_v55  ;;  %v3820_v31 = vsel %vm2814_vm1, 4294967295, %v3819_v31  ;;  %v1093_v53 = vsel %vm3818_vm14, %v2654_v22, %v1087_v38  ;;  %vm3822_vm10 = vmmov %vm3818_vm14 }
 0x1f3   :  { %v1159_v21 = vmul.f32 %v1781_v60, %v1127_v42  ;;  %3821 = vst [vmem:[#allocation60_spill] sm:$0xff] %v3820_v31  ;;  %v1105_v15 = vsel %vm3822_vm10, %v1087_v38, %v2637_v39  ;;  %v1129_v47 = vsel %vm3806_vm9, %v1093_v53, 0.0  ;;  %1193 = vrot.lane.b32.xlu1 %v2075_v59, %s1947_s6  ;;  %vm3824_vm10 = vcmp.lt.s32.totalorder %v2295_v8, 17  ;;  %v3828_v42 = vld [vmem:[#allocation16_spill] sm:$0xff]  ;;  %v3830_v38 = vld [vmem:[#allocation19_spill] sm:$0xff] }
 0x1f4   :  { %v2820_v24 = vadd.f32 %v1160_v0, %v1051_v1  ;;  %v1130_v28 = vsel %vm2814_vm1, %v1105_v15, 0.0  ;;  %v1161_v41 = vmul.f32 %v1781_v60, %v1129_v47  ;;  %v489_v5 = vsel %vm3824_vm10, %v2659_v25, %v460_v33  ;;  %v3825_v1 = vld [vmem:[#allocation15_spill] sm:$0xff]  ;;  %vm3826_vm14 = vmmov %vm3824_vm10 }
 0x1f5   :  { %v2818_v17 = vadd.f32 %v1159_v21, %v1050_v11  ;;  %v1162_v3 = vmul.f32 %v1781_v60, %v1130_v28  ;;  %v2834_v45 = vpop.permute.xlu1 %576  ;;  %v476_v14 = vpop.permute.xlu0 %475  ;;  %v1710_v10 = vunpack.i.h.bf16 %v3825_v1  ;;  %v485_v61 = vsel %vm3826_vm14, %v460_v33, %v2680_v26  ;;  %vm3829_vm14 = vmmov %vm3824_vm10  ;;  %v2888_v15 = vld [vmem:[#allocation7] sm:$0xff]  }
 0x1f6   :  { %v2836_v27 = vadd.f32 %v1161_v41, %v1052_v2  ;;  %v519_v49 = vsel %vm2362_vm6, %v489_v5, 0.0  ;;  %v1722_v55 = vunpack.i.h.bf16 %v3828_v42  ;;  %v520_v11 = vsel %vm2370_vm7, %v485_v61, 0.0  ;;  %3831 = vst [vmem:[#allocation15_spill] sm:$0xff] %v2888_v15 }
 0x1f7   :  { %v2838_v22 = vadd.f32 %v1162_v3, %v1053_v58  ;;  %1201 = vrot.lane.b32.xlu1 %v3783_v37, %s1947_s6  ;;  %v481_v21 = vsel %vm3824_vm10, %v2680_v26, %v476_v14  ;;  %v411_v0 = vmul.f32 %v1710_v10, %v2189_v48  ;;  %v1746_v33 = vunpack.i.h.bf16 %v3830_v38  ;;  %v3832_v48 = vld [vmem:[#allocation31_spill] sm:$0xff] }
 0x1f8   :  { %v521_v26 = vsel %vm2392_vm11, %v481_v21, 0.0  ;;  %v1447_v28 = vunpack.c.l.bf16 %v2888_v15  ;;  %v409_v41 = vmul.f32 %v1710_v10, %v3832_v48  ;;  %v412_v3 = vmul.f32 %v1710_v10, %v2241_v19 }
 0x1f9   :  { %3823 = vst [vmem:[#allocation28_spill] sm:$0xff] %v2838_v22  ;;  %v593_v39 = vpop.permute.xlu1 %592  ;;  %v831_v46 = vpop.permute.xlu0 %830  ;;  %v1950_v1 = vmov 32   ;;  %v443_v61 = vadd.f32 %v1722_v55, %v411_v0  ;;  %vm3833_vm10 = vcmp.lt.s32.totalorder %v2295_v8, 16  ;;  %v3837_v22 = vld [vmem:[#allocation52_spill] sm:$0xff] }
 0x1fa   :  { %1818 = vset.pattern.permute.xlu0 %v1950_v1  ;;  %v441_v1 = vadd.f32 %v1722_v55, %v409_v41  ;;  %v856_v0 = vsel %vm3836_vm5, %v831_v46, %v2737_v54 }
 0x1fb   :  { %1209 = vrot.lane.b32.xlu1 %v2081_v62, %s1947_s6 }
 0x1fd   :  { %v2844_v56 = vpop.permute.xlu1 %697  ;;  %v2846_v13 = vpop.permute.xlu0 %846 }
 0x1ff   :  { %1306 = vrot.lane.b32.xlu1 %v2055_v51, %s1949_s7  ;;  %v410_v51 = vmul.f32 %v1710_v10, %v2231_v6  ;;  %v3903_v10 = vld [vmem:[#allocation46_spill] sm:$0xff] }
 0x201   :  { %v2850_v60 = vpop.permute.xlu1 %713  ;;  %v2852_v18 = vpop.permute.xlu0 %1187  ;;  %v442_v53 = vadd.f32 %v1722_v55, %v410_v51 }
 0x203   :  { %1314 = vrot.lane.b32.xlu1 %v2075_v59, %s1949_s7  ;;  %v3827_v59 = vld [vmem:[#allocation20_spill] sm:$0xff] }
 0x204   :  { %v1734_v63 = vunpack.i.h.bf16 %v3827_v59 }
 0x205   :  { %v2860_v2 = vpop.permute.xlu1 %943  ;;  %v2868_v4 = vpop.permute.xlu0 %1072 }
 0x206   :  { %v551_v58 = vmul.f32 %v1734_v63, %v519_v49  ;;  %v552_v47 = vmul.f32 %v1734_v63, %v520_v11  ;;  %v553_v19 = vmul.f32 %v1734_v63, %v521_v26 }
 0x207   :  { %1322 = vrot.lane.b32.xlu1 %v3783_v37, %s1949_s7  ;;  %v493_v37 = vsel %vm3829_vm14, %v476_v14, %v2659_v25  ;;  %vm3834_vm14 = vmmov %vm3833_vm10 }
 0x208   :  { %v518_v25 = vsel %vm2400_vm12, %v493_v37, 0.0  ;;  %v567_v51 = vadd.f32 %v551_v58, %v442_v53  ;;  %v568_v37 = vadd.f32 %v552_v47, %v443_v61  ;;  %vm3839_vm12 = vmmov %vm3834_vm14 }
 0x209   :  { %v2879_v6 = vpop.permute.xlu1 %959  ;;  %v2897_v14 = vpop.permute.xlu0 %1088  ;;  %v550_v38 = vmul.f32 %v1734_v63, %v518_v25 }
 0x20b   :  { %1330 = vrot.lane.b32.xlu1 %v2081_v62, %s1949_s7  ;;  %v1448_v62 = vunpack.c.h.bf16 %v2888_v15  ;;  %v444_v15 = vadd.f32 %v1722_v55, %v412_v3 }
 0x20d   :  { %v585_v5 = vpop.permute.xlu1 %584  ;;  %v1819_v21 = vpack.i.bf16 %v1448_v62, %v1447_v28  ;;  %v569_v55 = vadd.f32 %v553_v19, %v444_v15  ;;  %v2918_v47 = vpop.permute.xlu0 %1195  ;;  %v566_v62 = vadd.f32 %v550_v38, %v441_v1  ;;  %v3847_v1 = vld [vmem:[#allocation23_spill] sm:$0xff] }
 0x20e   :  { %v610_v49 = vsel %vm3833_vm10, %v585_v5, %v593_v39  ;;  %v614_v59 = vsel %vm3834_vm14, %v2834_v45, %v585_v5  ;;  %vm3838_vm10 = vmmov %vm3836_vm5 }
 0x20f   :  { %v641_v42 = vsel %vm2347_vm3, %v610_v49, 0.0  ;;  %v672_v11 = vmul.f32 %v1746_v33, %v614_v59  ;;  %1820 = vperm.xlu0 %1818, %v1819_v21   ;;  %v860_v26 = vsel %vm3838_vm10, %v3837_v22, %v831_v46  ;;  %v864_v46 = vsel %vm3836_vm5, %v2846_v13, %v3837_v22 }
 0x210   :  { %v673_v48 = vmul.f32 %v1746_v33, %v641_v42  ;;  %v886_v49 = vsel %vm2362_vm6, %v860_v26, 0.0  ;;  %vm3843_vm10 = vcmp.lt.s32.totalorder %v2295_v8, 15 }
 0x211   :  { %v688_v58 = vadd.f32 %v672_v11, %v567_v51  ;;  %v601_v53 = vpop.permute.xlu1 %600  ;;  %v3841_v51 = vld [vmem:[#allocation21_spill] sm:$0xff]  ;;  %v3845_v11 = vld [vmem:[#allocation24_spill] sm:$0xff] }
 0x212   :  { %v689_v5 = vadd.f32 %v673_v48, %v568_v37  ;;  %v606_v28 = vsel %vm3834_vm14, %v593_v39, %v601_v53  ;;  %v618_v63 = vsel %vm3839_vm12, %v601_v53, %v2834_v45  ;;  %v1752_v39 = vunpack.i.h.bf16 %v3841_v51  ;;  %vm3842_vm12 = vmmov %vm3836_vm5 }
 0x213   :  { %v639_v3 = vsel %vm2351_vm4, %v618_v63, 0.0  ;;  %v674_v25 = vmul.f32 %v1746_v33, %v606_v28  ;;  %v887_v45 = vsel %vm3806_vm9, %v856_v0, 0.0  ;;  %v852_v19 = vsel %vm3842_vm12, %v2737_v54, %v2846_v13  ;;  %vm3844_vm14 = vmmov %vm3843_vm10 }
 0x214   :  { %v671_v61 = vmul.f32 %v1746_v33, %v639_v3  ;;  %v1758_v21 = vunpack.i.h.bf16 %v3845_v11  ;;  %v885_v37 = vsel %vm3808_vm8, %v864_v46, 0.0  ;;  %v1770_v0 = vunpack.i.h.bf16 %v3847_v1  ;;  %vm3849_vm5 = vmmov %vm3843_vm10 }
 0x215   :  { %v690_v15 = vadd.f32 %v674_v25, %v569_v55  ;;  %v706_v59 = vpop.permute.xlu1 %705  ;;  %v888_v63 = vsel %vm2392_vm11, %v852_v19, 0.0  ;;  %v2951_v55 = vpop.permute.xlu0 %1203  ;;  %vm3850_vm12 = vmmov %vm3849_vm5 }
 0x216   :  { %v687_v42 = vadd.f32 %v671_v61, %v566_v62  ;;  %v731_v22 = vsel %vm3843_vm10, %v706_v59, %v2850_v60  ;;  %v735_v33 = vsel %vm3844_vm14, %v2844_v56, %v706_v59  ;;  %v918_v26 = vmul.f32 %v1758_v21, %v886_v49 }
 0x217   :  { %v765_v48 = vsel %vm2405_vm13, %v735_v33, 0.0  ;;  %v766_v13 = vsel %vm2472_vm2, %v731_v22, 0.0  ;;  %v919_v28 = vmul.f32 %v1758_v21, %v887_v45  ;;  %v917_v62 = vmul.f32 %v1758_v21, %v885_v37 }
 0x218   :  { %v797_v53 = vmul.f32 %v1752_v39, %v765_v48  ;;  %v798_v3 = vmul.f32 %v1752_v39, %v766_v13  ;;  %vm3851_vm10 = vcmp.lt.s32.totalorder %v2295_v8, 113  ;;  %v920_v11 = vmul.f32 %v1758_v21, %v888_v63 }
 0x219   :  { %v722_v25 = vpop.permute.xlu1 %721  ;;  %v1098_v49 = vsel %vm3851_vm10, %v2868_v4, %v2796_v20  ;;  %vm3853_vm14 = vmmov %vm3851_vm10 }
 0x21a   :  { %v813_v46 = vadd.f32 %v797_v53, %v688_v58  ;;  %v727_v61 = vsel %vm3849_vm5, %v2850_v60, %v722_v25  ;;  %v739_v51 = vsel %vm3850_vm12, %v722_v25, %v2844_v56  ;;  %v814_v45 = vadd.f32 %v798_v3, %v689_v5  ;;  %vm3854_vm5 = vmmov %vm3851_vm10 }
 0x21b   :  { %v764_v19 = vsel %vm2514_vm15, %v739_v51, 0.0  ;;  %v767_v58 = vsel %vm2436_vm0, %v727_v61, 0.0  ;;  %v1102_v60 = vsel %vm3853_vm14, %v2763_v7, %v2868_v4  ;;  %v1094_v5 = vsel %vm3854_vm5, %v2796_v20, %v2897_v14  ;;  %vm3855_vm12 = vmmov %vm3854_vm5 }
 0x21c   :  { %v796_v22 = vmul.f32 %v1752_v39, %v764_v19  ;;  %v799_v33 = vmul.f32 %v1752_v39, %v767_v58  ;;  %v934_v56 = vadd.f32 %v918_v26, %v813_v46  ;;  %v1106_v37 = vsel %vm3855_vm12, %v2897_v14, %v2763_v7  ;;  %v2989_v26 = vpop.permute.xlu0 %1211 }
 0x21d   :  { %v952_v48 = vpop.permute.xlu1 %951  ;;  %v935_v1 = vadd.f32 %v919_v28, %v814_v45  ;;  %vm3856_vm10 = vcmp.lt.s32.totalorder %v2295_v8, 127  ;;  %v1131_v20 = vsel %vm3808_vm8, %v1102_v60, 0.0  ;;  %vm3858_vm5 = vnez %v3811_v50  ;;  %v3893_v50 = vld [vmem:[#allocation36_spill] sm:$0xff] }
 0x21e   :  { %v812_v13 = vadd.f32 %v796_v22, %v687_v42  ;;  %v815_v53 = vadd.f32 %v799_v33, %v690_v15  ;;  %v977_v4 = vsel %vm3856_vm10, %v952_v48, %v2879_v6  ;;  %vm3857_vm14 = vmmov %vm3856_vm10  ;;  %v1132_v21 = vsel %vm3858_vm5, %v1098_v49, 0.0 }
 0x21f   :  { %v981_v39 = vsel %vm3857_vm14, %v2860_v2, %v952_v48  ;;  %vm3859_vm12 = vnez %v3763_v30  ;;  %v1007_v14 = vsel %vm2405_vm13, %v977_v4, 0.0  ;;  %v1782_v3 = vunpack.i.h.bf16 %v3809_v57  ;;  %vm3860_vm14 = vmmov %vm3856_vm10 }
 0x220   :  { %v1006_v7 = vsel %vm3859_vm12, %v981_v39, 0.0  ;;  %v933_v15 = vadd.f32 %v917_v62, %v812_v13  ;;  %v1039_v28 = vmul.f32 %v1770_v0, %v1007_v14  ;;  %v936_v63 = vadd.f32 %v920_v11, %v815_v53  ;;  %v3863_v53 = vld [vmem:[#allocation55_spill] sm:$0xff]  ;;  %v3864_v39 = vld [vmem:[#allocation53_spill] sm:$0xff] }
 0x221   :  { %v1038_v42 = vmul.f32 %v1770_v0, %v1006_v7  ;;  %v1133_v25 = vsel %vm3806_vm9, %v1094_v5, 0.0  ;;  %v1134_v46 = vsel %vm2814_vm1, %v1106_v37, 0.0  ;;  %v968_v61 = vpop.permute.xlu1 %967  ;;  %v1163_v19 = vmul.f32 %v1782_v3, %v1131_v20  ;;  %v3866_v7 = vld [vmem:[#allocation65_spill] sm:$0xff] }
 0x222   :  { %v1055_v49 = vadd.f32 %v1039_v28, %v934_v56  ;;  %v973_v45 = vsel %vm3856_vm10, %v2879_v6, %v968_v61  ;;  %v985_v62 = vsel %vm3860_vm14, %v968_v61, %v2860_v2  ;;  %v1164_v58 = vmul.f32 %v1782_v3, %v1132_v21  ;;  %v3010_v22 = vpop.permute.xlu0 %1803  ;;  %vm3865_vm14 = vmmov %vm3856_vm10 }
 0x223   :  { %v1054_v51 = vadd.f32 %v1038_v42, %v933_v15  ;;  %vm3861_vm5 = vnez %v3753_v40  ;;  %v1009_v60 = vsel %vm2436_vm0, %v985_v62, 0.0  ;;  %3862 = vst [vmem:[#allocation20_spill] sm:$0xff] %v3010_v22  ;;  %v1165_v11 = vmul.f32 %v1782_v3, %v1133_v25  ;;  %v3891_v22 = vld [vmem:[#allocation30_spill] sm:$0xff] }
 0x224   :  { %v1008_v57 = vsel %vm3861_vm5, %v973_v45, 0.0  ;;  %v1041_v56 = vmul.f32 %v1770_v0, %v1009_v60  ;;  %v1166_v5 = vmul.f32 %v1782_v3, %v1134_v46  ;;  %v3014_v48 = vadd.f32 %v1164_v58, %v1055_v49  ;;  %v3867_v3 = vld [vmem:[#allocation64_spill] sm:$0xff]  ;;  %v3869_v46 = vld [vmem:[#allocation66_spill] sm:$0xff] }
 0x225   :  { %v1040_v33 = vmul.f32 %v1770_v0, %v1008_v57  ;;  %v964_v37 = vpop.permute.xlu1 %963  ;;  %v3012_v6 = vadd.f32 %v1163_v19, %v1054_v51  ;;  %v3095_v31 = vunpack.i.l.bf16 %v3891_v22 }
 0x226   :  { %v1057_v13 = vadd.f32 %v1041_v56, %v936_v63  ;;  %v971_v4 = vsel %vm3856_vm10, %v3863_v53, %v964_v37  ;;  %v983_v20 = vsel %vm3865_vm14, %v964_v37, %v3864_v39  ;;  %vm3886_vm10 = vcmp.lt.s32.totalorder %v2295_v8, 16 }
 0x227   :  { %v1056_v2 = vadd.f32 %v1040_v33, %v935_v1  ;;  %v1000_v0 = vsel %vm3861_vm5, %v971_v4, 0.0  ;;  %v1001_v21 = vsel %vm2436_vm0, %v983_v20, 0.0  ;;  %v3028_v1 = vpop.permute.xlu0 %1809  ;;  %v3875_v33 = vld [vmem:[#allocation14_spill] sm:$0xff]  ;;  %v3879_v4 = vld [vmem:[#allocation17_spill] sm:$0xff]  ;;  %3892 = vst [vmem:[#allocation62_spill] sm:$0xff] %v3095_v31  ;;  %vm3895_vm14 = vmmov %vm3886_vm10 }
 0x228   :  { %v1032_v14 = vmul.f32 %v3866_v7, %v1000_v0  ;;  %v1033_v15 = vmul.f32 %v3866_v7, %v1001_v21  ;;  %v3032_v28 = vadd.f32 %v1166_v5, %v1057_v13  ;;  %v1704_v56 = vunpack.i.l.bf16 %v3875_v33  ;;  %v3876_v5 = vld [vmem:[#allocation12_spill] sm:$0xff]  ;;  %v3878_v13 = vld [vmem:[#allocation18_spill] sm:$0xff]  ;;  %v3884_v33 = vld [vmem:[#allocation33_spill] sm:$0xff] }
 0x229   :  { %v3030_v42 = vadd.f32 %v1165_v11, %v1056_v2  ;;  %v3034_v63 = vpop.permute.xlu1 %1189  ;;  %v1715_v53 = vunpack.i.l.bf16 %v3878_v13  ;;  %v3066_v39 = vunpack.i.l.bf16 %v3879_v4  ;;  %v3880_v21 = vld [vmem:[#allocation22_spill] sm:$0xff]  ;;  %v3887_v13 = vld [vmem:[#allocation27_spill] sm:$0xff]  ;;  %vm3897_vm1 = vmmov %vm3886_vm10 }
 0x22a   :  { %v3037_v25 = vadd.f32 %v1032_v14, %v3867_v3  ;;  %v3040_v61 = vadd.f32 %v1033_v15, %v3869_v46  ;;  %v398_v37 = vmul.f32 %v1704_v56, %v3876_v5  ;;  %v399_v20 = vmul.f32 %v1704_v56, %v2013_v36  ;;  %v3881_v14 = vld [vmem:[#allocation25_spill] sm:$0xff]  ;;  %v3883_v3 = vld [vmem:[#allocation26_spill] sm:$0xff]  ;;  %v3885_v5 = vld [vmem:[#allocation39_spill] sm:$0xff] }
 0x22b   :  { %v3042_v51 = vpop.permute.xlu0 %1066  ;;  %v400_v0 = vmul.f32 %v1704_v56, %v2033_v44  ;;  %v1739_v7 = vunpack.i.l.bf16 %v3880_v21  ;;  %v3072_v15 = vunpack.i.l.bf16 %v3881_v14  ;;  %v1763_v46 = vunpack.i.l.bf16 %v3883_v3  ;;  %v3888_v36 = vld [vmem:[#allocation29_spill] sm:$0xff] }
 0x22c   :  { %3868 = vst [vmem:[#allocation16_spill] sm:$0xff] %v3037_v25  ;;  %3870 = vst [vmem:[#allocation19_spill] sm:$0xff] %v3040_v61  ;;  %v607_v61 = vsel %vm3886_vm10, %v3885_v5, %v3884_v33  ;;  %v3080_v25 = vunpack.i.h.bf16 %v3887_v13  ;;  %v3083_v4 = vunpack.i.l.bf16 %v3887_v13  ;;  %v3086_v44 = vunpack.i.h.bf16 %v3888_v36 }
 0x22d   :  { %3871 = vst [vmem:[#allocation31_spill] sm:$0xff] %v3042_v51  ;;  %v3044_v49 = vpop.permute.xlu1 %1197  ;;  %3882 = vst [vmem:[#allocation24_spill] sm:$0xff] %v3072_v15  ;;  %v397_v21 = vmul.f32 %v1704_v56, %v2011_v35  ;;  %v3092_v3 = vunpack.i.l.bf16 %v3888_v36  ;;  %v430_v13 = vadd.f32 %v1715_v53, %v398_v37  ;;  %v611_v35 = vsel %vm3886_vm10, %v3893_v50, %v3885_v5  ;;  %v3899_v37 = vld [vmem:[#allocation43_spill] sm:$0xff]  ;;  %v3908_v5 = vld [vmem:[#allocation34_spill] sm:$0xff] }
 0x22e   :  { %3889 = vst [vmem:[#allocation61_spill] sm:$0xff] %v3086_v44  ;;  %v629_v56 = vsel %vm2347_vm3, %v607_v61, 0.0  ;;  %v431_v36 = vadd.f32 %v1715_v53, %v399_v20  ;;  %v3109_v44 = vadd.f32 %v1715_v53, %v400_v0  ;;  %v3904_v61 = vld [vmem:[#allocation32_spill] sm:$0xff]  ;;  %vm3905_vm3 = vcmp.lt.s32.totalorder %v2295_v8, 17 }
 0x22f   :  { %v3046_v45 = vpop.permute.xlu0 %1074  ;;  %3890 = vst [vmem:[#allocation23_spill] sm:$0xff] %v3092_v3  ;;  %v3898_v3 = vld [vmem:[#allocation35_spill] sm:$0xff]  ;;  %v486_v20 = vsel %vm3905_vm3, %v3904_v61, %v3903_v10  ;;  %v3141_v23 = vmul.f32 %v1739_v7, %v611_v35  ;;  %v3143_v15 = vmul.f32 %v1739_v7, %v629_v56 }
 0x230   :  { %3872 = vst [vmem:[#allocation56_spill] sm:$0xff] %v3046_v45  ;;  %v3137_v45 = vadd.f32 %v1715_v53, %v397_v21  ;;  %v507_v35 = vsel %vm2362_vm6, %v486_v20, 0.0  ;;  %v3916_v20 = vld [vmem:[#allocation47_spill] sm:$0xff] }
 0x231   :  { %v3048_v62 = vpop.permute.xlu1 %1205 }
 0x233   :  { %v3050_v19 = vpop.permute.xlu0 %1082 }
 0x234   :  { %3873 = vst [vmem:[#allocation52_spill] sm:$0xff] %v3050_v19 }
 0x235   :  { %v3052_v58 = vpop.permute.xlu1 %1213 }
 0x237   :  { %v3054_v57 = vpop.permute.xlu0 %1308 }
 0x239   :  { %v3056_v60 = vpop.permute.xlu1 %1058 }
 0x23a   :  { %3874 = vst [vmem:[#allocation57_spill] sm:$0xff] %v3056_v60 }
 0x23b   :  { %v3059_v11 = vpop.permute.xlu0 %1316 }
 0x23d   :  { %v3062_v2 = vpop.permute.xlu1 %1060 }
 0x23e   :  { %3877 = vst [vmem:[#allocation21_spill] sm:$0xff] %v3062_v2  ;;  %v3894_v2 = vld [vmem:[#allocation41_spill] sm:$0xff] }
 0x23f   :  { %v3089_v14 = vpop.permute.xlu0 %1324  ;;  %v615_v60 = vsel %vm3895_vm14, %v3894_v2, %v3893_v50  ;;  %v603_v22 = vsel %vm3897_vm1, %v3884_v33, %v3894_v2  ;;  %vm3900_vm14 = vcmp.lt.s32.totalorder %v2295_v8, 15  ;;  %v3906_v2 = vld [vmem:[#allocation45_spill] sm:$0xff] }
 0x240   :  { %v728_v31 = vsel %vm3900_vm14, %v3899_v37, %v3898_v3  ;;  %vm3902_vm10 = vmmov %vm3900_vm14  ;;  %v627_v0 = vsel %vm2351_vm4, %v615_v60, 0.0  ;;  %v3152_v60 = vmul.f32 %v1739_v7, %v603_v22 }
 0x241   :  { %v3101_v19 = vpop.permute.xlu1 %1068  ;;  %vm3907_vm1 = vmmov %vm3902_vm10  ;;  %v754_v21 = vsel %vm2472_vm2, %v728_v31, 0.0  ;;  %v3160_v56 = vmul.f32 %v1739_v7, %v627_v0  ;;  %v3917_v0 = vld [vmem:[#allocation44_spill] sm:$0xff] }
 0x242   :  { %3896 = vst [vmem:[#allocation63_spill] sm:$0xff] %v3101_v19  ;;  %v3901_v19 = vld [vmem:[#allocation38_spill] sm:$0xff]  ;;  %vm3909_vm14 = vmmov %vm3905_vm3  ;;  %vm1336_vm3 = vcmp.lt.s32.totalorder %v2295_v8, 111  ;;  %v3185_v7 = vmul.f32 %v1763_v46, %v754_v21 }
 0x243   :  { %v732_v50 = vsel %vm3902_vm10, %v3901_v19, %v3899_v37  ;;  %v736_v33 = vsel %vm3907_vm1, %v3906_v2, %v3901_v19  ;;  %v482_v51 = vsel %vm3909_vm14, %v3903_v10, %v3908_v5  ;;  %v3139_v37 = vpop.permute.xlu0 %1332  ;;  %vm3910_vm4 = vmmov %vm3907_vm1  ;;  %vm1215_vm10 = vcmp.lt.s32.totalorder %v2295_v8, 112 }
 0x244   :  { %v724_v41 = vsel %vm3910_vm4, %v3898_v3, %v3906_v2  ;;  %v753_v53 = vsel %vm2405_vm13, %v732_v50, 0.0  ;;  %v752_v3 = vsel %vm2514_vm15, %v736_v33, 0.0  ;;  %v508_v10 = vsel %vm2370_vm7, %v482_v51, 0.0  ;;  %v3912_v50 = vld [vmem:[#allocation48_spill] sm:$0xff]  ;;  %vm3913_vm2 = vmmov %vm3909_vm14 }
 0x245   :  { %v3150_v19 = vpop.permute.xlu1 %1076  ;;  %v755_v22 = vsel %vm2436_vm0, %v724_v41, 0.0  ;;  %v478_v31 = vsel %vm3913_vm2, %v3908_v5, %v3912_v50  ;;  %vm3914_vm1 = vmmov %vm3913_vm2  ;;  %v1226_v32 = vsel %vm1215_vm10, %v2852_v18, %v2918_v47  ;;  %v3183_v51 = vmul.f32 %v1763_v46, %v753_v53 }
 0x246   :  { %3911 = vst [vmem:[#allocation55_spill] sm:$0xff] %v3150_v19  ;;  %v490_v54 = vsel %vm3914_vm1, %v3912_v50, %v3904_v61  ;;  %vm3918_vm7 = vcmp.lt.s32.totalorder %v2295_v8, 127  ;;  %v539_v33 = vmul.f32 %v3066_v39, %v507_v35  ;;  %v3196_v5 = vmul.f32 %v1763_v46, %v752_v3 }
 0x247   :  { %v3181_v59 = vpop.permute.xlu0 %1814  ;;  %v3191_v2 = vsel %vm3918_vm7, %v3917_v0, %v3916_v20  ;;  %v540_v41 = vmul.f32 %v3066_v39, %v508_v10  ;;  %v1222_v53 = vsel %vm1215_vm10, %v2918_v47, %v2951_v55  ;;  %v1347_v21 = vsel %vm1336_vm3, %v3054_v57, %v3059_v11  ;;  %vm3925_vm14 = vmmov %vm3918_vm7 }
 0x248   :  { %3915 = vst [vmem:[#allocation53_spill] sm:$0xff] %v3181_v59  ;;  %3919 = vst [vmem:[#allocation65_spill] sm:$0xff] %v3191_v2  ;;  %v3207_v50 = vmul.f32 %v1763_v46, %v755_v22  ;;  %vm3923_vm15 = vnez %v3803_v16  ;;  %v509_v3 = vsel %vm2392_vm11, %v478_v31, 0.0  ;;  %v1280_v10 = vmul.f32 %v3083_v4, %v1226_v32  ;;  %v3924_v59 = vld [vmem:[#allocation37_spill] sm:$0xff] }
 0x249   :  { %v3194_v61 = vpop.permute.xlu1 %1084  ;;  %3921 = vst [vmem:[#allocation66_spill] sm:$0xff] %v3196_v5  ;;  %v506_v35 = vsel %vm3923_vm15, %v490_v54, 0.0  ;;  %v3218_v47 = vsel %vm3925_vm14, %v3916_v20, %v3924_v59  ;;  %v1811_v46 = vunpack.i.l.bf16 %v3028_v1  ;;  %v1227_v16 = vsel %vm1215_vm10, %v3034_v63, %v3044_v49 }
 0x24a   :  { %3920 = vst [vmem:[#allocation64_spill] sm:$0xff] %v3194_v61  ;;  %3922 = vst [vmem:[#allocation14_spill] sm:$0xff] %v3207_v50  ;;  %v3230_v31 = vadd.f32 %v539_v33, %v430_v13  ;;  %vm3927_vm4 = vnez %v3799_v29  ;;  %v1223_v32 = vsel %vm1215_vm10, %v3044_v49, %v3048_v62  ;;  %v1373_v20 = vsel %vm3859_vm12, %v1347_v21, 0.0 }
 0x24b   :  { %v3228_v22 = vpop.permute.xlu0 %1191  ;;  %v1249_v54 = vsel %vm3927_vm4, %v1222_v53, 0.0  ;;  %v3240_v2 = vadd.f32 %v540_v41, %v431_v36  ;;  %v3243_v19 = vmul.f32 %v3066_v39, %v506_v35  ;;  %v3246_v13 = vmul.f32 %v3066_v39, %v509_v3  ;;  %v3928_v53 = vld [vmem:[#allocation42_spill] sm:$0xff]  ;;  %vm3264_vm1 = vmand %vm3927_vm4, %vm2405_vm13 }
 0x24c   :  { %3926 = vst [vmem:[#allocation12_spill] sm:$0xff] %v3228_v22  ;;  %v1230_v33 = vsel %vm1215_vm10, %v2989_v26, %v2852_v18  ;;  %v3929_v22 = vld [vmem:[#allocation50_spill] sm:$0xff]  ;;  %vm3930_vm2 = vcmp.lt.s32.totalorder %v2295_v8, 1  ;;  %v1296_v36 = vadd.f32 %v1280_v10, %v2818_v17  ;;  %v1284_v41 = vmul.f32 %v3080_v25, %v1227_v16 }
 0x24d   :  { %v1311_v61 = vpop.permute.xlu1 %1310  ;;  %v3256_v49 = vsel %vm3930_vm2, %v3929_v22, %v3928_v53  ;;  %v1343_v18 = vsel %vm1336_vm3, %v3059_v11, %v3089_v14  ;;  %v1281_v21 = vmul.f32 %v3083_v4, %v1249_v54  ;;  %v1218_v17 = vsel %vm1215_vm10, %v2951_v55, %v2989_v26  ;;  %vm3938_vm14 = vmmov %vm3930_vm2 }
 0x24e   :  { %v1253_v35 = vsel %vm3927_vm4, %v1223_v32, 0.0  ;;  %v1405_v3 = vmul.f32 %v1811_v46, %v1373_v20  ;;  %vm3933_vm7 = vnez %v3815_v43  ;;  %v1812_v16 = vunpack.i.h.bf16 %v3028_v1 }
 0x24f   :  { %v1251_v10 = vsel %vm3933_vm7, %v1230_v33, 0.0  ;;  %v1231_v11 = vsel %vm1215_vm10, %v3052_v58, %v3034_v63  ;;  %v1339_v54 = vsel %vm1336_vm3, %v3089_v14, %v3139_v37  ;;  %v1219_v26 = vsel %vm1215_vm10, %v3048_v62, %v3052_v58  ;;  %vm3300_vm15 = vmand %vm3933_vm7, %vm2436_vm0  ;;  %v3308_v14 = vpop.permute.xlu0 %1199 }
 0x250   :  { %v1374_v32 = vsel %vm3264_vm1, %v1343_v18, 0.0  ;;  %v1351_v63 = vsel %vm1336_vm3, %v3139_v37, %v3054_v57  ;;  %3936 = vst [vmem:[#allocation18_spill] sm:$0xff] %v3308_v14  ;;  %v1282_v58 = vmul.f32 %v3083_v4, %v1218_v17  ;;  %v1300_v20 = vadd.f32 %v1284_v41, %v3012_v6 }
 0x251   :  { %v1319_v55 = vpop.permute.xlu1 %1318  ;;  %v1285_v33 = vmul.f32 %v3080_v25, %v1253_v35  ;;  %v1255_v29 = vsel %vm3933_vm7, %v1231_v11, 0.0  ;;  %v1421_v5 = vadd.f32 %v1405_v3, %v1296_v36  ;;  %v1375_v57 = vsel %vm3861_vm5, %v1339_v54, 0.0  ;;  %v3937_v35 = vld [vmem:[#allocation40_spill] sm:$0xff] }
 0x252   :  { %v1348_v62 = vsel %vm1336_vm3, %v1311_v61, %v1319_v55  ;;  %v1283_v14 = vmul.f32 %v3083_v4, %v1251_v10  ;;  %v1286_v50 = vmul.f32 %v3080_v25, %v1219_v26  ;;  %v1406_v17 = vmul.f32 %v1811_v46, %v1374_v32 }
 0x253   :  { %v1377_v18 = vsel %vm3859_vm12, %v1348_v62, 0.0  ;;  %v1376_v6 = vsel %vm3300_vm15, %v1351_v63, 0.0  ;;  %v857_v62 = vsel %vm3938_vm14, %v3937_v35, %v3929_v22  ;;  %v1297_v36 = vadd.f32 %v1281_v21, %v2820_v24  ;;  %v3336_v43 = vpop.permute.xlu0 %1207  ;;  %v3939_v21 = vld [vmem:[#allocation28_spill] sm:$0xff] }
 0x254   :  { %v1409_v37 = vmul.f32 %v1812_v16, %v1377_v18  ;;  %v1301_v4 = vadd.f32 %v1285_v33, %v3014_v48  ;;  %v1287_v10 = vmul.f32 %v3080_v25, %v1255_v29  ;;  %v1407_v54 = vmul.f32 %v1811_v46, %v1375_v57 }
 0x255   :  { %v1327_v41 = vpop.permute.xlu1 %1326  ;;  %v1437_v32 = vmax.f32 %v1421_v5, 0.0  ;;  %v1408_v63 = vmul.f32 %v1811_v46, %v1376_v6  ;;  %v1298_v24 = vadd.f32 %v1282_v58, %v2836_v27  ;;  %v676_v6 = vadd.f32 %v3141_v23, %v3230_v31 }
 0x256   :  { %v1425_v3 = vadd.f32 %v1409_v37, %v1300_v20  ;;  %v1344_v11 = vsel %vm1336_vm3, %v1319_v55, %v1327_v41  ;;  %v1299_v20 = vadd.f32 %v1283_v14, %v3939_v21  ;;  %v1302_v55 = vadd.f32 %v1286_v50, %v3030_v42 }
 0x257   :  { %v1378_v26 = vsel %vm3264_vm1, %v1344_v11, 0.0  ;;  %v1422_v37 = vadd.f32 %v1406_v17, %v1297_v36  ;;  %v1303_v46 = vadd.f32 %v1287_v10, %v3032_v28  ;;  %v1423_v57 = vadd.f32 %v1407_v54, %v1298_v24  ;;  %v3366_v23 = vpop.permute.xlu0 %1304 }
 0x258   :  { %v1441_v18 = vmax.f32 %v1425_v3, 0.0  ;;  %v1410_v22 = vmul.f32 %v1812_v16, %v1378_v26  ;;  %v1424_v42 = vadd.f32 %v1408_v63, %v1299_v20  ;;  %vm3941_vm2 = vcmp.lt.s32.totalorder %v2295_v8, 127 }
 0x259   :  { %v1335_v48 = vpop.permute.xlu1 %1334  ;;  %v557_v28 = vadd.f32 %v3246_v13, %v3109_v44  ;;  %v1438_v3 = vmax.f32 %v1422_v37, 0.0  ;;  %v874_v11 = vsel %vm2362_vm6, %v857_v62, 0.0  ;;  %v875_v44 = vsel %vm3806_vm9, %v3256_v49, 0.0  ;;  %vm3943_vm6 = vmmov %vm3938_vm14  ;;  %v3948_v37 = vld [vmem:[#allocation31_spill] sm:$0xff] }
 0x25a   :  { %v1426_v33 = vadd.f32 %v1410_v22, %v1301_v4  ;;  %v1340_v29 = vsel %vm1336_vm3, %v1327_v41, %v1335_v48  ;;  %v1352_v25 = vsel %vm1336_vm3, %v1335_v48, %v1311_v61  ;;  %v1453_v5 = vpack.c.bf16 %v1441_v18, %v1437_v32  ;;  %v3940_v41 = vld [vmem:[#allocation49_spill] sm:$0xff]  ;;  %v3942_v4 = vld [vmem:[#allocation51_spill] sm:$0xff]  ;;  %v3969_v22 = vld [vmem:[#allocation18_spill] sm:$0xff] }
 0x25b   :  { %v1379_v27 = vsel %vm3861_vm5, %v1340_v29, 0.0  ;;  %v1380_v14 = vsel %vm3300_vm15, %v1352_v25, 0.0  ;;  %v970_v61 = vsel %vm3941_vm2, %v3924_v59, %v3940_v41  ;;  %v554_v59 = vadd.f32 %v3243_v19, %v3137_v45  ;;  %v3944_v19 = vld [vmem:[#allocation24_spill] sm:$0xff]  ;;  %v3408_v29 = vpop.permute.xlu0 %1312 }
 0x25c   :  { %v1411_v50 = vmul.f32 %v1812_v16, %v1379_v27  ;;  %v1412_v58 = vmul.f32 %v1812_v16, %v1380_v14  ;;  %v1442_v17 = vmax.f32 %v1426_v33, 0.0  ;;  %v849_v16 = vsel %vm3938_vm14, %v3928_v53, %v3942_v4  ;;  %v3950_v33 = vld [vmem:[#allocation52_spill] sm:$0xff] }
 0x25d   :  { %v3358_v36 = vpop.permute.xlu1 %1183  ;;  %v861_v12 = vsel %vm3943_vm6, %v3942_v4, %v3937_v35  ;;  %v1439_v62 = vmax.f32 %v1423_v57, 0.0  ;;  %v1440_v53 = vmax.f32 %v1424_v42, 0.0  ;;  %v995_v32 = vsel %vm2405_vm13, %v3218_v47, 0.0  ;;  %vm3946_vm13 = vmmov %vm3941_vm2  ;;  %v3955_v42 = vld [vmem:[#allocation14_spill] sm:$0xff] }
 0x25e   :  { %v1427_v31 = vadd.f32 %v1411_v50, %v1302_v55  ;;  %v1428_v10 = vadd.f32 %v1412_v58, %v1303_v46  ;;  %v1454_v13 = vpack.c.bf16 %v1442_v17, %v1438_v3  ;;  %v677_v45 = vadd.f32 %v3143_v15, %v3240_v2  ;;  %v3947_v55 = vld [vmem:[#allocation56_spill] sm:$0xff]  ;;  %v3956_v50 = vld [vmem:[#allocation63_spill] sm:$0xff]  ;;  %v3957_v58 = vld [vmem:[#allocation21_spill] sm:$0xff] }
 0x25f   :  { %v906_v63 = vmul.f32 %v3944_v19, %v874_v11  ;;  %v876_v49 = vsel %vm2392_vm11, %v849_v16, 0.0  ;;  %v678_v35 = vadd.f32 %v3152_v60, %v557_v28  ;;  %v873_v24 = vsel %vm3808_vm8, %v861_v12, 0.0  ;;  %v3960_v28 = vld [vmem:[#allocation54_spill] sm:$0xff]  ;;  %v3962_v16 = vld [vmem:[#allocation60_spill] sm:$0xff] }
 0x260   :  { %v1443_v54 = vmax.f32 %v1427_v31, 0.0  ;;  %v1444_v26 = vmax.f32 %v1428_v10, 0.0  ;;  %1488 = vmatprep.subr.bf16.mxu0 %v1454_v13  ;;  %v982_v15 = vsel %vm3946_vm13, %v3940_v41, %v3917_v0  ;;  %v996_v34 = vsel %vm3861_vm5, %v970_v61, 0.0  ;;  %v3959_v41 = vld [vmem:[#allocation66_spill] sm:$0xff]  ;;  %v3964_v10 = vld [vmem:[#allocation55_spill] sm:$0xff] }
 0x261   :  { %v3385_v18 = vpop.permute.xlu1 %1185  ;;  %1489 = vmatpush1.bf16.msra.mxu0 %v1453_v5  ;;  %v675_v2 = vadd.f32 %v3160_v56, %v554_v59  ;;  %v907_v47 = vmul.f32 %v3944_v19, %v875_v44  ;;  %v801_v60 = vadd.f32 %v3183_v51, %v676_v6  ;;  %v908_v20 = vmul.f32 %v3944_v19, %v876_v49  ;;  %v3952_v51 = vld [vmem:[#allocation57_spill] sm:$0xff]  ;;  %v3967_v13 = vld [vmem:[#allocation62_spill] sm:$0xff]  ;;  %v3968_v49 = vld [vmem:[#allocation23_spill] sm:$0xff] }
 0x262   :  { %v1456_v21 = vpack.c.bf16 %v1444_v26, %v1440_v53  ;;  %v1455_v38 = vpack.c.bf16 %v1443_v54, %v1439_v62  ;;  %vm3949_vm11 = vcmp.lt.s32.totalorder %v2295_v8, 113  ;;  %v802_v56 = vadd.f32 %v3185_v7, %v677_v45  ;;  %v3965_v44 = vld [vmem:[#allocation65_spill] sm:$0xff] }
 0x263   :  { %v1095_v48 = vsel %vm3949_vm11, %v3948_v37, %v3947_v55  ;;  %vm3951_vm2 = vmmov %vm3949_vm11  ;;  %v905_v25 = vmul.f32 %v3944_v19, %v873_v24  ;;  %v997_v27 = vsel %vm2436_vm0, %v982_v15, 0.0  ;;  %v922_v14 = vadd.f32 %v906_v63, %v801_v60 }
 0x264   :  { %v1091_v0 = vsel %vm3951_vm2, %v3947_v55, %v3950_v33  ;;  %1531 = vmatprep.subr.bf16.mxu1 %v1456_v21  ;;  %vm3953_vm14 = vmmov %vm3951_vm2  ;;  %v803_v7 = vadd.f32 %v3955_v42, %v678_v35  ;;  %v923_v6 = vadd.f32 %v907_v47, %v802_v56  ;;  %v800_v61 = vadd.f32 %v3959_v41, %v675_v2  ;;  %v1321_v21 = vpop.permute.xlu0 %1320  ;;  %v3970_v2 = vld [vmem:[#allocation12_spill] sm:$0xff]  ;;  %v3971_v55 = vld [vmem:[#allocation61_spill] sm:$0xff] }
 0x265   :  { %v1099_v5 = vsel %vm3953_vm14, %v3952_v51, %v3948_v37  ;;  %vm3954_vm6 = vmmov %vm3951_vm2  ;;  %1532 = vmatpush1.bf16.msra.mxu1 %v1455_v38  ;;  %v1194_v57 = vpop.permute.xlu1 %1193  ;;  %vm3961_vm11 = vnez %v3960_v28  ;;  %v1121_v11 = vsel %vm3806_vm9, %v1091_v0, 0.0  ;;  %vm3963_vm0 = vnez %v3962_v16  ;;  %v3973_v56 = vld [vmem:[#allocation64_spill] sm:$0xff] }
 0x266   :  { %v1103_v46 = vsel %vm3954_vm6, %v3950_v33, %v3952_v51  ;;  %vm3958_vm13 = vmmov %vm3951_vm2  ;;  %v1120_v3 = vsel %vm3961_vm11, %v1095_v48, 0.0  ;;  %v924_v4 = vadd.f32 %v908_v20, %v803_v7  ;;  %v1119_v9 = vsel %vm3808_vm8, %v1099_v5, 0.0  ;;  %v3972_v48 = vld [vmem:[#allocation20_spill] sm:$0xff] }
 0x267   :  { %v1100_v17 = vsel %vm3958_vm13, %v3957_v58, %v3956_v50  ;;  %v1122_v31 = vsel %vm3963_vm0, %v1103_v46, 0.0  ;;  %v1096_v59 = vsel %vm3951_vm2, %v3956_v50, %v3964_v10  ;;  %v3966_v12 = vsel %vm3859_vm12, %v3965_v44, 0.0  ;;  %vm3975_vm14 = vmmov %vm3951_vm2 }
 0x268   :  { %v1026_v62 = vmul.f32 %v3967_v13, %v3966_v12  ;;  %v1027_v54 = vmul.f32 %v3967_v13, %v995_v32  ;;  %v921_v53 = vadd.f32 %v905_v25, %v800_v61  ;;  %v1123_v26 = vsel %vm3808_vm8, %v1100_v17, 0.0  ;;  %vm3974_vm8 = vmmov %vm3951_vm2  ;;  %v3977_v61 = vld [vmem:[#allocation67_spill] sm:$0xff] }
 0x269   :  { %v3448_v45 = vpop.permute.xlu1 %1201  ;;  %v1028_v19 = vmul.f32 %v3967_v13, %v996_v34  ;;  %v1029_v63 = vmul.f32 %v3967_v13, %v997_v27  ;;  %v1152_v35 = vmul.f32 %v3968_v49, %v1120_v3  ;;  %v1153_v24 = vmul.f32 %v3968_v49, %v1121_v11  ;;  %v3978_v3 = vld [vmem:[#allocation53_spill] sm:$0xff] }
 0x26a   :  { %v1151_v38 = vmul.f32 %v3968_v49, %v1119_v9  ;;  %v1154_v15 = vmul.f32 %v3968_v49, %v1122_v31  ;;  %v1124_v32 = vsel %vm3961_vm11, %v1096_v59, 0.0  ;;  %v1220_v47 = vsel %vm1215_vm10, %v3970_v2, %v3969_v22  ;;  %v1329_v9 = vpop.permute.xlu0 %1328 }
 0x26b   :  { %v1043_v34 = vadd.f32 %v1027_v54, %v922_v14  ;;  %v1044_v60 = vadd.f32 %v1028_v19, %v923_v6  ;;  %v1045_v20 = vadd.f32 %v1029_v63, %v924_v4  ;;  %v1155_v37 = vmul.f32 %v3971_v55, %v1123_v26 }
 0x26c   :  { %v3464_v33 = vunpack.i.h.bf16 %v3972_v48  ;;  %v1042_v0 = vadd.f32 %v1026_v62, %v921_v53  ;;  %v1092_v25 = vsel %vm3974_vm8, %v3964_v10, %v3973_v56  ;;  %v1104_v51 = vsel %vm3975_vm14, %v3973_v56, %v3957_v58 }
 0x26d   :  { %v1210_v5 = vpop.permute.xlu1 %1209  ;;  %v1805_v46 = vunpack.i.l.bf16 %v3972_v48  ;;  %v1168_v27 = vadd.f32 %v1152_v35, %v1043_v34  ;;  %v1156_v14 = vmul.f32 %v3971_v55, %v1124_v32  ;;  %v1241_v7 = vsel %vm3927_vm4, %v1220_v47, 0.0 }
 0x26e   :  { %v1169_v50 = vadd.f32 %v1153_v24, %v1044_v60  ;;  %v1167_v17 = vadd.f32 %v1151_v38, %v1042_v0  ;;  %v1170_v6 = vadd.f32 %v1154_v15, %v1045_v20  ;;  %v1341_v41 = vsel %vm1336_vm3, %v3408_v29, %v1321_v21 }
 0x26f   :  { %v1171_v28 = vadd.f32 %v1155_v37, %v3977_v61  ;;  %v3483_v58 = vunpack.i.h.bf16 %v3978_v3  ;;  %v1125_v11 = vsel %vm3806_vm9, %v1092_v25, 0.0  ;;  %v1126_v4 = vsel %vm3963_vm0, %v1104_v51, 0.0 }
 0x270   :  { %v1816_v31 = vunpack.i.l.bf16 %v3978_v3  ;;  %v1273_v10 = vmul.f32 %v1805_v46, %v1241_v7  ;;  %v1224_v59 = vsel %vm1215_vm10, %v3358_v36, %v3970_v2  ;;  %v1228_v44 = vsel %vm1215_vm10, %v3336_v43, %v3358_v36 }
 0x271   :  { %v1307_v12 = vpop.permute.xlu1 %1306  ;;  %v1172_v13 = vadd.f32 %v1156_v14, %v3979_v52  ;;  %v1366_v16 = vsel %vm3264_vm1, %v1341_v41, 0.0  ;;  %v1225_v62 = vsel %vm1215_vm10, %v3385_v18, %v1194_v57  ;;  %v1221_v54 = vsel %vm1215_vm10, %v1194_v57, %v3448_v45 }
 0x272   :  { %v1157_v53 = vmul.f32 %v3971_v55, %v1125_v11  ;;  %v1158_v26 = vmul.f32 %v3971_v55, %v1126_v4  ;;  %v1216_v36 = vsel %vm1215_vm10, %v3969_v22, %v3336_v43  ;;  %v1337_v19 = vsel %vm1336_vm3, %v1321_v21, %v1329_v9  ;;  %v3982_v4 = vld [vmem:[#allocation19_spill] sm:$0xff] }
 0x273   :  { %v1345_v63 = vsel %vm1336_vm3, %v3366_v23, %v3408_v29  ;;  %v1243_v57 = vsel %vm3933_vm7, %v1228_v44, 0.0  ;;  %v1272_v35 = vmul.f32 %v1805_v46, %v1224_v59  ;;  %v1349_v24 = vsel %vm1336_vm3, %v1329_v9, %v3366_v23 }
 0x274   :  { %v1289_v38 = vadd.f32 %v1273_v10, %v1168_v27  ;;  %v1398_v15 = vmul.f32 %v1816_v31, %v1366_v16  ;;  %v1276_v43 = vmul.f32 %v3464_v33, %v1225_v62  ;;  %v1245_v21 = vsel %vm3927_vm4, %v1221_v54, 0.0  ;;  %v3981_v27 = vld [vmem:[#allocation16_spill] sm:$0xff] }
 0x275   :  { %v1315_v32 = vpop.permute.xlu1 %1314  ;;  %v1274_v22 = vmul.f32 %v1805_v46, %v1216_v36  ;;  %v1367_v29 = vsel %vm3861_vm5, %v1337_v19, 0.0  ;;  %v1229_v2 = vsel %vm1215_vm10, %v1210_v5, %v3385_v18  ;;  %v1365_v23 = vsel %vm3859_vm12, %v1345_v63, 0.0 }
 0x276   :  { %v1346_v47 = vsel %vm1336_vm3, %v1307_v12, %v1315_v32  ;;  %v1275_v34 = vmul.f32 %v1805_v46, %v1243_v57  ;;  %v1368_v60 = vsel %vm3300_vm15, %v1349_v24, 0.0  ;;  %v1288_v55 = vadd.f32 %v1272_v35, %v1167_v17 }
 0x277   :  { %v1369_v20 = vsel %vm3859_vm12, %v1346_v47, 0.0  ;;  %v1277_v37 = vmul.f32 %v3464_v33, %v1245_v21  ;;  %v1217_v18 = vsel %vm1215_vm10, %v3448_v45, %v1210_v5  ;;  %v1414_v0 = vadd.f32 %v1398_v15, %v1289_v38  ;;  %v3983_v15 = vld [vmem:[#allocation15_spill] sm:$0xff]  ;;  %v1834_v21 = vld [vmem:[#allocation2] sm:$0xff] }
 0x278   :  { %v1401_v48 = vmul.f32 %v3483_v58, %v1369_v20  ;;  %v1399_v56 = vmul.f32 %v1816_v31, %v1367_v29  ;;  %v1292_v25 = vadd.f32 %v1276_v43, %v1171_v28  ;;  %v1247_v51 = vsel %vm3933_vm7, %v1229_v2, 0.0 }
 0x279   :  { %v1323_v46 = vpop.permute.xlu1 %1322  ;;  %v1173_v14 = vadd.f32 %v1157_v53, %v3981_v27  ;;  %v1290_v30 = vadd.f32 %v1274_v22, %v1169_v50  ;;  %v1400_v42 = vmul.f32 %v1816_v31, %v1368_v60  ;;  %v1397_v17 = vmul.f32 %v1816_v31, %v1365_v23 }
 0x27a   :  { %v1342_v7 = vsel %vm1336_vm3, %v1315_v32, %v1323_v46  ;;  %v1278_v41 = vmul.f32 %v3464_v33, %v1217_v18  ;;  %v1417_v45 = vadd.f32 %v1401_v48, %v1292_v25  ;;  %v1291_v61 = vadd.f32 %v1275_v34, %v1170_v6  ;;  %v1835_v34 = vld [vmem:[#allocation2 + $0x8] sm:$0xff] }
 0x27b   :  { %v1370_v5 = vsel %vm3264_vm1, %v1342_v7, 0.0  ;;  %v1293_v28 = vadd.f32 %v1277_v37, %v1172_v13  ;;  %v1279_v3 = vmul.f32 %v3464_v33, %v1247_v51  ;;  %v1174_v9 = vadd.f32 %v1158_v26, %v3982_v4 }
 0x27c   :  { %v1402_v11 = vmul.f32 %v3483_v58, %v1370_v5  ;;  %v1413_v50 = vadd.f32 %v1397_v17, %v1288_v55  ;;  %v1415_v10 = vadd.f32 %v1399_v56, %v1290_v30  ;;  %v1430_v44 = vmax.f32 %v1414_v0, 0.0  ;;  %v1836_v0 = vld [vmem:[#allocation2 + $0x10] sm:$0xff] }
 0x27d   :  { %v1331_v59 = vpop.permute.xlu1 %1330  ;;  %v1416_v52 = vadd.f32 %v1400_v42, %v1291_v61  ;;  %v1294_v6 = vadd.f32 %v1278_v41, %v1173_v14  ;;  %v1433_v13 = vmax.f32 %v1417_v45, 0.0  ;;  %v1295_v54 = vadd.f32 %v1279_v3, %v1174_v9  ;;  %v1837_v45 = vld [vmem:[#allocation2 + $0x18] sm:$0xff] }
 0x27e   :  { %v1418_v31 = vadd.f32 %v1402_v11, %v1293_v28  ;;  %v1338_v16 = vsel %vm1336_vm3, %v1323_v46, %v1331_v59  ;;  %v1350_v39 = vsel %vm1336_vm3, %v1331_v59, %v1307_v12  ;;  %v1429_v19 = vmax.f32 %v1413_v50, 0.0 }
 0x27f   :  { %v1371_v33 = vsel %vm3861_vm5, %v1338_v16, 0.0  ;;  %v1372_v62 = vsel %vm3300_vm15, %v1350_v39, 0.0  ;;  %v1431_v12 = vmax.f32 %v1415_v10, 0.0  ;;  %v1432_v24 = vmax.f32 %v1416_v52, 0.0 }
 0x280   :  { %v1403_v53 = vmul.f32 %v3483_v58, %v1371_v33  ;;  %v1404_v26 = vmul.f32 %v3483_v58, %v1372_v62  ;;  %v1434_v36 = vmax.f32 %v1418_v31, 0.0  ;;  %v1449_v8 = vpack.c.bf16 %v1433_v13, %v1429_v19 }
 0x281   :  { %vm1472_vm9 = vcmask 261120   ;;  %v1562_v32 = vunpack.c.l.bf16 %v1834_v21  ;;  %v1563_v29 = vunpack.c.h.bf16 %v1834_v21  ;;  %v1564_v60 = vunpack.c.l.bf16 %v1835_v34 }
 0x282   :  { %v1419_v63 = vadd.f32 %v1403_v53, %v1294_v6  ;;  %v1420_v49 = vadd.f32 %v1404_v26, %v1295_v54  ;;  %v1450_v57 = vpack.c.bf16 %v1434_v36, %v1430_v44  ;;  %v1565_v37 = vunpack.c.h.bf16 %v1835_v34 }
 0x283   :  { %v1566_v56 = vunpack.c.l.bf16 %v1836_v0  ;;  %v1567_v42 = vunpack.c.h.bf16 %v1836_v0  ;;  %v1568_v5 = vunpack.c.l.bf16 %v1837_v45  ;;  %v1569_v4 = vunpack.c.h.bf16 %v1837_v45 }
 0x284   :  { %v1435_v35 = vmax.f32 %v1419_v63, 0.0  ;;  %1490 = vmatprep.subr.bf16.mxu0 %v1450_v57  ;;  %v1436_v40 = vmax.f32 %v1420_v49, 0.0 }
 0x285   :  { %1491 = vmatpush1.bf16.msra.mxu0 %v1449_v8 }
 0x286   :  { %v1452_v1 = vpack.c.bf16 %v1436_v40, %v1432_v24  ;;  %v1451_v38 = vpack.c.bf16 %v1435_v35, %v1431_v12 }
 0x288   :  { %1533 = vmatprep.subr.bf16.mxu1 %v1452_v1  ;;  %1651 = vmatmul.mubr.msk.bf16.vlgmr.msra.gmra.mxu0 %vm1472_vm9, %v3983_v15 }
 0x289   :  { %1534 = vmatpush1.bf16.msra.mxu1 %v1451_v38 }
 0x28a   :  { %v1821_v58 = vpop.permute.xlu0 %1820 }
 0x28b   :  { %v1822_v43 = vunpack.i.l.bf16 %v1821_v58  ;;  %v1823_v2 = vunpack.i.h.bf16 %v1821_v58 }
 0x28c   :  { %1652 = vmatmul.mubr.msk.bf16.vlgmr.msra.gmra.mxu1 %vm1472_vm9, %v3983_v15 }
 0x348   :  { %v1510_v22 = vpop.f32.mrf.mxu0 }
 0x349   :  { %v1511_v47 = vadd.f32 %v1822_v43, %v1510_v22 }
 0x34a   :  { %v1512_v23 = vpop.f32.mrf.mxu0 }
 0x34b   :  { %v1513_v20 = vadd.f32 %v1822_v43, %v1512_v23  ;;  %v1570_v55 = vadd.f32 %v1562_v32, %v1511_v47 }
 0x34c   :  { %v1553_v18 = vpop.f32.mrf.mxu1  ;;  %v1514_v48 = vpop.f32.mrf.mxu0 }
 0x34d   :  { %v1554_v25 = vadd.f32 %v1822_v43, %v1553_v18  ;;  %v1571_v51 = vadd.f32 %v1563_v29, %v1513_v20  ;;  %v1578_v46 = vmax.f32 %v1570_v55, 0.0  ;;  %v1515_v27 = vadd.f32 %v1823_v2, %v1514_v48 }
 0x34e   :  { %v1555_v14 = vpop.f32.mrf.mxu1  ;;  %v1516_v30 = vpop.f32.mrf.mxu0 }
 0x34f   :  { %v1556_v7 = vadd.f32 %v1822_v43, %v1555_v14  ;;  %v1572_v17 = vadd.f32 %v1564_v60, %v1554_v25  ;;  %v1579_v41 = vmax.f32 %v1571_v51, 0.0  ;;  %v1586_v61 = vmin.f32 %v1578_v46, 6.0 }
 0x350   :  { %v1574_v28 = vadd.f32 %v1566_v56, %v1515_v27  ;;  %v1557_v3 = vpop.f32.mrf.mxu1  ;;  %v1517_v11 = vadd.f32 %v1823_v2, %v1516_v30 }
 0x351   :  { %v1573_v9 = vadd.f32 %v1565_v37, %v1556_v7  ;;  %v1580_v50 = vmax.f32 %v1572_v17, 0.0  ;;  %v1587_v10 = vmin.f32 %v1579_v41, 6.0  ;;  %v1558_v59 = vadd.f32 %v1823_v2, %v1557_v3 }
 0x352   :  { %v1582_v44 = vmax.f32 %v1574_v28, 0.0  ;;  %v1575_v52 = vadd.f32 %v1567_v42, %v1517_v11  ;;  %v1559_v31 = vpop.f32.mrf.mxu1 }
 0x353   :  { %v1581_v16 = vmax.f32 %v1573_v9, 0.0  ;;  %v1576_v39 = vadd.f32 %v1568_v5, %v1558_v59  ;;  %v1560_v6 = vadd.f32 %v1823_v2, %v1559_v31  ;;  %v1657_v33 = vpack.c.bf16 %v1587_v10, %v1586_v61 }
 0x354   :  { %v1583_v13 = vmax.f32 %v1575_v52, 0.0  ;;  %v1588_v62 = vmin.f32 %v1580_v50, 6.0  ;;  %v1590_v36 = vmin.f32 %v1582_v44, 6.0 }
 0x355   :  { %v1589_v54 = vmin.f32 %v1581_v16, 6.0  ;;  %v1584_v53 = vmax.f32 %v1576_v39, 0.0  ;;  %v1577_v26 = vadd.f32 %v1569_v4, %v1560_v6  ;;  %1618 = vst [vmem:[#allocation8] sm:$0xff] %v1657_v33 }
 0x356   :  { %v1591_v19 = vmin.f32 %v1583_v13, 6.0 }
 0x357   :  { %v1585_v63 = vmax.f32 %v1577_v26, 0.0  ;;  %v1658_v49 = vpack.c.bf16 %v1589_v54, %v1588_v62  ;;  %v1592_v8 = vmin.f32 %v1584_v53, 6.0 }
 0x358   :  { %v1659_v57 = vpack.c.bf16 %v1591_v19, %v1590_v36 }
 0x359   :  { %v1593_v12 = vmin.f32 %v1585_v63, 6.0  ;;  %1619 = vst [vmem:[#allocation8 + $0x8] sm:$0xff] %v1658_v49 }
 0x35a   :  { %1620 = vst [vmem:[#allocation8 + $0x10] sm:$0xff] %v1659_v57 }
 0x35b   :  { %v1660_v35 = vpack.c.bf16 %v1593_v12, %v1592_v8 }
 0x35d   :  { %1621 = vst [vmem:[#allocation8 + $0x18] sm:$0xff] %v1660_v35 }
 0x35e   :  { %1909 = shalt.err (!%p1906_p5)
}
 0x35f   :  { %1633 = dma.vmem_to_hbm [thread:$0]  %s1628_s9, 512, %s3577_s3, [#allocation4], %s1928_s22, %s1928_s22, %s1929_s23  }
 0x360   :  { %1922 = dma.done.wait [#allocation4], 512  }
 0x361   :  { %1923 = vsyncadd [#allocation4], 4294966784 }
 0x362   :  { %1637 = vsyncpa [#allocation3], 1 }
 0x363   :  { %1638 = vsyncpa [#allocation6], 1 }
 0x364   :  { %1639 = vsyncpa [#allocation4], 1 }

</bundles_post_ra>
